<compile_context>
chip_gen: v7x
topology: tpu7x:2x2x1
jax: 0.10.0
libtpu: 0.0.40
codegen_flags: <defaults>
</compile_context>

<pallas_src>
import functools

import jax
import jax.numpy as jnp
from jax import lax
from jax.experimental import pallas as pl
from jax.experimental.pallas import tpu as pltpu


# --------------------------------------------------------------------------
# In-kernel helpers
# --------------------------------------------------------------------------
def _layernorm(x, gamma, beta, eps=1e-5):
    # PyTorch nn.LayerNorm: biased variance, eps inside the sqrt.  f32 math.
    mean = jnp.mean(x, axis=-1, keepdims=True)
    var = jnp.mean((x - mean) ** 2, axis=-1, keepdims=True)
    return (x - mean) * lax.rsqrt(var + eps) * gamma + beta


# --------------------------------------------------------------------------
# Fused decoder kernel: one grid step = (batch chunk, layer)
# --------------------------------------------------------------------------
def decoder_kernel(mask_ref, tgt_ref, enc_ref,
                   wqkv_s_ref, bqkv_s_ref, wo_s_ref, bo_s_ref,
                   wq_c_ref, bq_c_ref, wkv_c_ref, bkv_c_ref,
                   wo_c_ref, bo_c_ref,
                   ln_g_ref, ln_b_ref,
                   w1_ref, b1_ref, w2_ref, b2_ref,
                   out_ref, *, heads, head_size, bc):
    e = heads * head_size
    layer = pl.program_id(1)

    # Layer 0: load this batch chunk's input into the resident output block,
    # which doubles as the layer-to-layer carry (no extra VMEM scratch).
    @pl.when(layer == 0)
    def _():
        out_ref[...] = tgt_ref[...]

    x = out_ref[...]                     # (bc, L, E) f32 carry
    l = x.shape[1]
    s_len = enc_ref.shape[1]
    x2 = x.reshape(bc * l, e)            # flatten rows -> MXU M = bc*L
    enc2 = enc_ref[...].reshape(bc * s_len, e)

    cdt = wqkv_s_ref.dtype               # compute dtype (bf16 by default)
    mask_bias = mask_ref[...]            # (L, L) additive causal bias, f32

    # ---- all linear projections row-major: x @ W(in,out) + b(1,out) --------
    # (1/sqrt(head_size) scale is pre-folded into the q columns / q bias.)
    qkv = jnp.dot(x2.astype(cdt), wqkv_s_ref[0],
                  preferred_element_type=jnp.float32) + bqkv_s_ref[0]
    q_c = jnp.dot(x2.astype(cdt), wq_c_ref[0],
                  preferred_element_type=jnp.float32) + bq_c_ref[0]
    kv_c = jnp.dot(enc2.astype(cdt), wkv_c_ref[0],
                   preferred_element_type=jnp.float32) + bkv_c_ref[0]

    def attention(q, k, v, bias):
        """Head-batched attention. q:(Lq,E) k,v:(Lk,E); scale already in q."""
        lq, lk = q.shape[0], k.shape[0]
        # Per-head split via sublane reshape of the transposed activations.
        qh = jnp.transpose(q.T.reshape(heads, head_size, lq), (0, 2, 1))
        kh = k.T.reshape(heads, head_size, lk)
        vh = v.T.reshape(heads, head_size, lk)
        # scores[h, q, k] = sum_d Q[h, q, d] * K^T[h, d, k]
        sc = lax.dot_general(qh.astype(cdt), kh.astype(cdt),
                             (((2,), (1,)), ((0,), (0,))),
                             preferred_element_type=jnp.float32)
        if bias is not None:
            sc = sc + bias[None, :, :]
        # numerically-stable softmax (exact reciprocal, f32)
        sc = sc - jnp.max(sc, axis=-1, keepdims=True)
        p = jnp.exp(sc)
        p = p / jnp.sum(p, axis=-1, keepdims=True)
        # ctx^T[h, d, q] = sum_k V^T[h, d, k] * P[h, q, k]
        ctx_t = lax.dot_general(vh.astype(cdt), p.astype(cdt),
                                (((2,), (2,)), ((0,), (0,))),
                                preferred_element_type=jnp.float32)
        return ctx_t.reshape(e, lq).T    # (Lq, E)

    sa_parts, ca_parts = [], []
    for bi in range(bc):                 # bc is small (B / batch_chunks)
        r0, r1 = bi * l, (bi + 1) * l
        c0, c1 = bi * s_len, (bi + 1) * s_len
        sa_parts.append(attention(qkv[r0:r1, :e], qkv[r0:r1, e:2 * e],
                                  qkv[r0:r1, 2 * e:], mask_bias))
        # cross-attention query is the raw `target` (reference semantics)
        ca_parts.append(attention(q_c[r0:r1], kv_c[c0:c1, :e],
                                  kv_c[c0:c1, e:], None))
    sa_ctx = sa_parts[0] if bc == 1 else jnp.concatenate(sa_parts, axis=0)
    ca_ctx = ca_parts[0] if bc == 1 else jnp.concatenate(ca_parts, axis=0)

    lg = ln_g_ref[0]                     # (3, E) f32
    lb = ln_b_ref[0]

    sa = jnp.dot(sa_ctx.astype(cdt), wo_s_ref[0],
                 preferred_element_type=jnp.float32) + bo_s_ref[0]
    v1 = _layernorm(x2 + sa, lg[0], lb[0])

    ca = jnp.dot(ca_ctx.astype(cdt), wo_c_ref[0],
                 preferred_element_type=jnp.float32) + bo_c_ref[0]
    b_act = _layernorm(v1 + ca, lg[1], lb[1])

    # ---- feed-forward: Linear -> ReLU -> Linear, residual + norm3 ----------
    h = jnp.dot(b_act.astype(cdt), w1_ref[0],
                preferred_element_type=jnp.float32) + b1_ref[0]
    h = jnp.maximum(h, 0.0)
    h = jnp.dot(h.astype(cdt), w2_ref[0],
                preferred_element_type=jnp.float32) + b2_ref[0]
    n = _layernorm(b_act + h, lg[2], lb[2])

    out_ref[...] = n.reshape(bc, l, e)   # carry to the next layer / final out


# --------------------------------------------------------------------------
# Wrapper: one pallas_call for the whole decoder stack
# --------------------------------------------------------------------------
def decoder_forward(target, enc_src, packed, heads, *, batch_chunks=None):
    b, l, e = target.shape
    s = enc_src.shape[1]
    layers = packed["w_qkv_self"].shape[0]
    f = packed["w1"].shape[2]
    head_size = e // heads

    if batch_chunks is None:
        # 2 chunks -> both TensorCores active on v7x; weights streamed 2x total.
        batch_chunks = 2 if (b >= 2 and b % 2 == 0) else 1
    bc = b // batch_chunks
    assert bc * batch_chunks == b

    # Additive causal-mask bias (masked strictly below the diagonal, j < i),
    # pre-scaled because masked_fill happens before the 1/sqrt(hd) division.
    mask_bias = jnp.where(
        jnp.arange(l)[:, None] > jnp.arange(l)[None, :],
        jnp.float32(-1e9 / (head_size ** 0.5)), jnp.float32(0.0))

    def wspec(*shape):
        # Per-layer weight block indexed by the inner (layer) axis only:
        # fetched once per (chunk, layer); next layer prefetched while this
        # layer computes.
        return pl.BlockSpec((1,) + shape, lambda ci, li: (li, 0, 0))

    kernel = functools.partial(decoder_kernel, heads=heads,
                               head_size=head_size, bc=bc)
    return pl.pallas_call(
        kernel,
        out_shape=jax.ShapeDtypeStruct((b, l, e), jnp.float32),
        grid=(batch_chunks, layers),
        in_specs=[
            pl.BlockSpec((l, l), lambda ci, li: (0, 0)),           # causal bias
            pl.BlockSpec((bc, l, e), lambda ci, li: (ci, 0, 0)),   # target
            pl.BlockSpec((bc, s, e), lambda ci, li: (ci, 0, 0)),   # encSrc
            wspec(e, 3 * e), wspec(1, 3 * e),                      # self QKV
            wspec(e, e), wspec(1, e),                              # self out proj
            wspec(e, e), wspec(1, e),                              # cross Q
            wspec(e, 2 * e), wspec(1, 2 * e),                      # cross KV
            wspec(e, e), wspec(1, e),                              # cross out proj
            wspec(3, e), wspec(3, e),                              # LN gamma/beta
            wspec(e, f), wspec(1, f),                              # FFN W1/b1
            wspec(f, e), wspec(1, e),                              # FFN W2/b2
        ],
        # Output block depends only on the chunk axis -> stays VMEM-resident
        # across the layer axis and doubles as the layer-to-layer carry.
        out_specs=pl.BlockSpec((bc, l, e), lambda ci, li: (ci, 0, 0)),
        compiler_params=pltpu.CompilerParams(
            dimension_semantics=("parallel", "arbitrary"),
            # Safe on all of v5e/v6e/v7x; re-derive when scaling E/F/L up.
            vmem_limit_bytes=48 * 1024 * 1024,
        ),
    )(mask_bias, target, enc_src,
      packed["w_qkv_self"], packed["b_qkv_self"],
      packed["w_o_self"], packed["b_o_self"],
      packed["w_q_cross"], packed["b_q_cross"],
      packed["w_kv_cross"], packed["b_kv_cross"],
      packed["w_o_cross"], packed["b_o_cross"],
      packed["ln_gamma"], packed["ln_beta"],
      packed["w1"], packed["b1"], packed["w2"], packed["b2"])


# --------------------------------------------------------------------------
# Parameter construction (PyTorch (out, in) layout) and host-side packing
# --------------------------------------------------------------------------
def init_natural_params(key, layers, e, expansion):
    f = expansion * e

    def linear(k, out_dim, in_dim):
        kw, kb = jax.random.split(k)
        bound = 1.0 / (in_dim ** 0.5)
        w = jax.random.uniform(kw, (out_dim, in_dim), jnp.float32, -bound, bound)
        bvec = jax.random.uniform(kb, (out_dim,), jnp.float32, -bound, bound)
        return w, bvec

    params = []
    for i in range(layers):
        ks = jax.random.split(jax.random.fold_in(key, i), 10)
        wq, bq = linear(ks[0], e, e)
        wk, bk = linear(ks[1], e, e)
        wv, bv = linear(ks[2], e, e)
        wo, bo = linear(ks[3], e, e)
        cwq, cbq = linear(ks[4], e, e)
        cwk, cbk = linear(ks[5], e, e)
        cwv, cbv = linear(ks[6], e, e)
        cwo, cbo = linear(ks[7], e, e)
        w1, fb1 = linear(ks[8], f, e)
        w2, fb2 = linear(ks[9], e, f)
        params.append({
            "self": {"wq": wq, "bq": bq, "wk": wk, "bk": bk,
                     "wv": wv, "bv": bv, "wo": wo, "bo": bo},
            "cross": {"wq": cwq, "bq": cbq, "wk": cwk, "bk": cbk,
                      "wv": cwv, "bv": cbv, "wo": cwo, "bo": cbo},
            "g1": jnp.ones((e,), jnp.float32), "be1": jnp.zeros((e,), jnp.float32),
            "g2": jnp.ones((e,), jnp.float32), "be2": jnp.zeros((e,), jnp.float32),
            "g3": jnp.ones((e,), jnp.float32), "be3": jnp.zeros((e,), jnp.float32),
            "w1": w1, "fb1": fb1, "w2": w2, "fb2": fb2,
        })
    return params


def pack_params(nat, heads, dtype=jnp.bfloat16):
    """Pack per-layer weights for the kernel.

    Weights are stored in (in, out) layout (used row-major as x @ W) and cast
    to `dtype` (bf16 by default for MXU throughput / halved HBM traffic).
    Biases and LayerNorm params stay f32 and lane-dense (1, N).
    The 1/sqrt(head_size) scale is folded into the Q weights/biases.
    """
    e = nat[0]["self"]["wq"].shape[0]
    scale = 1.0 / ((e // heads) ** 0.5)

    def stack(fn):
        return jnp.stack([fn(p) for p in nat], axis=0)

    def wc(x):
        return x.astype(dtype)

    return {
        "w_qkv_self": stack(lambda p: wc(jnp.concatenate(
            [p["self"]["wq"] * scale, p["self"]["wk"], p["self"]["wv"]], axis=0).T)),
        "b_qkv_self": stack(lambda p: jnp.concatenate(
            [p["self"]["bq"] * scale, p["self"]["bk"], p["self"]["bv"]])[None, :]),
        "w_o_self": stack(lambda p: wc(p["self"]["wo"].T)),
        "b_o_self": stack(lambda p: p["self"]["bo"][None, :]),
        "w_q_cross": stack(lambda p: wc((p["cross"]["wq"] * scale).T)),
        "b_q_cross": stack(lambda p: (p["cross"]["bq"] * scale)[None, :]),
        "w_kv_cross": stack(lambda p: wc(jnp.concatenate(
            [p["cross"]["wk"], p["cross"]["wv"]], axis=0).T)),
        "b_kv_cross": stack(lambda p: jnp.concatenate(
            [p["cross"]["bk"], p["cross"]["bv"]])[None, :]),
        "w_o_cross": stack(lambda p: wc(p["cross"]["wo"].T)),
        "b_o_cross": stack(lambda p: p["cross"]["bo"][None, :]),
        "ln_gamma": stack(lambda p: jnp.stack([p["g1"], p["g2"], p["g3"]])),
        "ln_beta": stack(lambda p: jnp.stack([p["be1"], p["be2"], p["be3"]])),
        "w1": stack(lambda p: wc(p["w1"].T)),
        "b1": stack(lambda p: p["fb1"][None, :]),
        "w2": stack(lambda p: wc(p["w2"].T)),
        "b2": stack(lambda p: p["fb2"][None, :]),
    }


# --------------------------------------------------------------------------
# Plain-JAX reference (mirrors the PyTorch module) for an in-script check
# --------------------------------------------------------------------------
def reference_decoder(target, enc_src, nat, heads):
    e = target.shape[-1]
    hd = e // heads
    seq = target.shape[1]
    hi = jax.lax.Precision.HIGHEST

    def torch_linear(x, w, bvec):
        return jnp.einsum('...i,oi->...o', x, w, precision=hi) + bvec

    def mha(q_in, kv_in, p, mask):
        bsz, lq, _ = q_in.shape
        lk = kv_in.shape[1]
        q = torch_linear(q_in, p["wq"], p["bq"]).reshape(bsz, lq, heads, hd)
        k = torch_linear(kv_in, p["wk"], p["bk"]).reshape(bsz, lk, heads, hd)
        v = torch_linear(kv_in, p["wv"], p["bv"]).reshape(bsz, lk, heads, hd)
        coff = jnp.einsum('bqhd,bkhd->bhqk', q, k, precision=hi)
        if mask is not None:
            coff = jnp.where(mask, -1e9, coff)
        att = jax.nn.softmax(coff / (hd ** 0.5), axis=3)
        ctx = jnp.einsum('bhqk,bkhd->bqhd', att, v, precision=hi).reshape(bsz, lq, e)
        return torch_linear(ctx, p["wo"], p["bo"])

    def ln(x, g, bvec, eps=1e-5):
        m = jnp.mean(x, -1, keepdims=True)
        var = jnp.mean((x - m) ** 2, -1, keepdims=True)
        return (x - m) / jnp.sqrt(var + eps) * g + bvec

    mask = jnp.arange(seq)[None, :] < jnp.arange(seq)[:, None]   # j < i
    x = target
    for p in nat:
        v = mha(x, x, p["self"], mask)
        v = ln(x + v, p["g1"], p["be1"])
        b = mha(x, enc_src, p["cross"], None)
        b = ln(v + b, p["g2"], p["be2"])
        n = torch_linear(b, p["w1"], p["fb1"])
        n = jnp.maximum(n, 0.0)
        n = torch_linear(n, p["w2"], p["fb2"])
        x = ln(b + n, p["g3"], p["be3"])
    return x


# --------------------------------------------------------------------------
if __name__ == "__main__":
    heads = 4
    embedding_size = 32
    expansion = 2
    layers = 2
    B, tgt_len, src_len = 2, 8, 8

    key = jax.random.PRNGKey(0)
    k_tgt, k_enc, k_par = jax.random.split(key, 3)
    target = jax.random.normal(k_tgt, (B, tgt_len, embedding_size), jnp.float32)
    enc_src = jax.random.normal(k_enc, (B, src_len, embedding_size), jnp.float32)

    nat_params = init_natural_params(k_par, layers, embedding_size, expansion)
    ref = reference_decoder(target, enc_src, nat_params, heads)

    # (1) f32-weight path: tighter parity check of the kernel math itself.
    packed_f32 = pack_params(nat_params, heads, dtype=jnp.float32)
    out_f32 = jax.block_until_ready(decoder_forward(target, enc_src, packed_f32, heads))
    assert out_f32.shape == (B, tgt_len, embedding_size)
    assert bool(jnp.all(jnp.isfinite(out_f32)))
    err_f32 = float(jnp.max(jnp.abs(out_f32 - ref)))
    assert err_f32 < 2e-2, f"f32 kernel deviates from reference: {err_f32}"

    # (2) bf16-weight path (production default): looser tolerance to absorb
    #     bf16 quantization of weights/matmul operands (f32 accumulation).
    packed_bf16 = pack_params(nat_params, heads, dtype=jnp.bfloat16)
    out_bf16 = jax.block_until_ready(decoder_forward(target, enc_src, packed_bf16, heads))
    assert out_bf16.shape == (B, tgt_len, embedding_size)
    assert bool(jnp.all(jnp.isfinite(out_bf16)))
    err_bf16 = float(jnp.max(jnp.abs(out_bf16 - ref)))
    assert err_bf16 < 1e-1, f"bf16 kernel deviates from reference: {err_bf16}"

    print("KERNEL_OK")
</pallas_src>

<mosaic_0001>
module attributes {stable_mosaic.version = 11 : i64} {
  func.func @decoder_kernel(%arg0: i32, %arg1: i32, %arg2: memref<8x8xf32, #tpu.memory_space<vmem>>, %arg3: memref<1x8x32xf32, #tpu.memory_space<vmem>>, %arg4: memref<1x8x32xf32, #tpu.memory_space<vmem>>, %arg5: memref<1x32x96xf32, #tpu.memory_space<vmem>>, %arg6: memref<1x1x96xf32, #tpu.memory_space<vmem>>, %arg7: memref<1x32x32xf32, #tpu.memory_space<vmem>>, %arg8: memref<1x1x32xf32, #tpu.memory_space<vmem>>, %arg9: memref<1x32x32xf32, #tpu.memory_space<vmem>>, %arg10: memref<1x1x32xf32, #tpu.memory_space<vmem>>, %arg11: memref<1x32x64xf32, #tpu.memory_space<vmem>>, %arg12: memref<1x1x64xf32, #tpu.memory_space<vmem>>, %arg13: memref<1x32x32xf32, #tpu.memory_space<vmem>>, %arg14: memref<1x1x32xf32, #tpu.memory_space<vmem>>, %arg15: memref<1x3x32xf32, #tpu.memory_space<vmem>>, %arg16: memref<1x3x32xf32, #tpu.memory_space<vmem>>, %arg17: memref<1x32x64xf32, #tpu.memory_space<vmem>>, %arg18: memref<1x1x64xf32, #tpu.memory_space<vmem>>, %arg19: memref<1x64x32xf32, #tpu.memory_space<vmem>>, %arg20: memref<1x1x32xf32, #tpu.memory_space<vmem>>, %arg21: memref<1x8x32xf32, #tpu.memory_space<vmem>>) attributes {dimension_semantics = [#tpu.dimension_semantics<parallel>, #tpu.dimension_semantics<arbitrary>], iteration_bounds = array<i64: 2, 2>, scalar_prefetch = 0 : i64, scratch_operands = 0 : i64, tpu.core_type = #tpu.core_type<tc>, window_params = [{pipeline_mode = #tpu.pipeline_mode<synchronous>, transform_indices = @transform_0, window_bounds = array<i64: 8, 8>}, {transform_indices = @transform_1, window_bounds = array<i64: 1, 8, 32>}, {transform_indices = @transform_2, window_bounds = array<i64: 1, 8, 32>}, {transform_indices = @transform_3, window_bounds = array<i64: 1, 32, 96>}, {transform_indices = @transform_4, window_bounds = array<i64: 1, 1, 96>}, {transform_indices = @transform_5, window_bounds = array<i64: 1, 32, 32>}, {transform_indices = @transform_6, window_bounds = array<i64: 1, 1, 32>}, {transform_indices = @transform_7, window_bounds = array<i64: 1, 32, 32>}, {transform_indices = @transform_8, window_bounds = array<i64: 1, 1, 32>}, {transform_indices = @transform_9, window_bounds = array<i64: 1, 32, 64>}, {transform_indices = @transform_10, window_bounds = array<i64: 1, 1, 64>}, {transform_indices = @transform_11, window_bounds = array<i64: 1, 32, 32>}, {transform_indices = @transform_12, window_bounds = array<i64: 1, 1, 32>}, {transform_indices = @transform_13, window_bounds = array<i64: 1, 3, 32>}, {transform_indices = @transform_14, window_bounds = array<i64: 1, 3, 32>}, {transform_indices = @transform_15, window_bounds = array<i64: 1, 32, 64>}, {transform_indices = @transform_16, window_bounds = array<i64: 1, 1, 64>}, {transform_indices = @transform_17, window_bounds = array<i64: 1, 64, 32>}, {transform_indices = @transform_18, window_bounds = array<i64: 1, 1, 32>}, {transform_indices = @transform_19, window_bounds = array<i64: 1, 8, 32>}]} {
    %c0_i32 = arith.constant 0 : i32
    %0 = arith.cmpi eq, %arg1, %c0_i32 : i32
    %1 = arith.extui %0 : i1 to i32
    %c0_i32_0 = arith.constant 0 : i32
    %2 = arith.cmpi ne, %1, %c0_i32_0 : i32
    scf.if %2 {
      %c0_89 = arith.constant 0 : index
      %c0_90 = arith.constant 0 : index
      %c0_91 = arith.constant 0 : index
      %200 = vector.load %arg3[%c0_89, %c0_90, %c0_91] : memref<1x8x32xf32, #tpu.memory_space<vmem>>, vector<1x8x32xf32>
      %c0_92 = arith.constant 0 : index
      %c0_93 = arith.constant 0 : index
      %c0_94 = arith.constant 0 : index
      %201 = vector.load %arg21[%c0_92, %c0_93, %c0_94] : memref<1x8x32xf32, #tpu.memory_space<vmem>>, vector<1x8x32xf32>
      tpu.vector_store %arg21[%c0_92, %c0_93, %c0_94], %200 {strides = array<i32>} : memref<1x8x32xf32, #tpu.memory_space<vmem>>, vector<1x8x32xf32>,
    } else {
    }
    %c0 = arith.constant 0 : index
    %c0_1 = arith.constant 0 : index
    %c0_2 = arith.constant 0 : index
    %3 = vector.load %arg21[%c0, %c0_1, %c0_2] : memref<1x8x32xf32, #tpu.memory_space<vmem>>, vector<1x8x32xf32>
    %4 = vector.shape_cast %3 : vector<1x8x32xf32> to vector<8x32xf32>
    %c0_3 = arith.constant 0 : index
    %c0_4 = arith.constant 0 : index
    %c0_5 = arith.constant 0 : index
    %5 = vector.load %arg4[%c0_3, %c0_4, %c0_5] : memref<1x8x32xf32, #tpu.memory_space<vmem>>, vector<1x8x32xf32>
    %6 = vector.shape_cast %5 : vector<1x8x32xf32> to vector<8x32xf32>
    %c0_6 = arith.constant 0 : index
    %c0_7 = arith.constant 0 : index
    %7 = vector.load %arg2[%c0_6, %c0_7] : memref<8x8xf32, #tpu.memory_space<vmem>>, vector<8x8xf32>
    %c0_8 = arith.constant 0 : index
    %c0_9 = arith.constant 0 : index
    %c0_10 = arith.constant 0 : index
    %8 = vector.load %arg5[%c0_8, %c0_9, %c0_10] : memref<1x32x96xf32, #tpu.memory_space<vmem>>, vector<1x32x96xf32>
    %9 = vector.shape_cast %8 : vector<1x32x96xf32> to vector<32x96xf32>
    %cst = arith.constant dense<0.000000e+00> : vector<8x96xf32>
    %10 = tpu.matmul %4, %9, %cst {dimension_numbers = #tpu.dot_dimension_numbers<[1], [0], [0], [1], [0, 0, 1, 1], [], []>} : vector<8x32xf32>, vector<32x96xf32>, vector<8x96xf32> -> vector<8x96xf32>
    %c0_11 = arith.constant 0 : index
    %c0_12 = arith.constant 0 : index
    %c0_13 = arith.constant 0 : index
    %11 = vector.load %arg6[%c0_11, %c0_12, %c0_13] : memref<1x1x96xf32, #tpu.memory_space<vmem>>, vector<1x1x96xf32>
    %12 = vector.shape_cast %11 : vector<1x1x96xf32> to vector<1x96xf32>
    %13 = vector.broadcast %12 : vector<1x96xf32> to vector<8x96xf32>
    %14 = arith.addf %10, %13 : vector<8x96xf32>
    %c0_14 = arith.constant 0 : index
    %c0_15 = arith.constant 0 : index
    %c0_16 = arith.constant 0 : index
    %15 = vector.load %arg9[%c0_14, %c0_15, %c0_16] : memref<1x32x32xf32, #tpu.memory_space<vmem>>, vector<1x32x32xf32>
    %16 = vector.shape_cast %15 : vector<1x32x32xf32> to vector<32x32xf32>
    %cst_17 = arith.constant dense<0.000000e+00> : vector<8x32xf32>
    %17 = tpu.matmul %4, %16, %cst_17 {dimension_numbers = #tpu.dot_dimension_numbers<[1], [0], [0], [1], [0, 0, 1, 1], [], []>} : vector<8x32xf32>, vector<32x32xf32>, vector<8x32xf32> -> vector<8x32xf32>
    %c0_18 = arith.constant 0 : index
    %c0_19 = arith.constant 0 : index
    %c0_20 = arith.constant 0 : index
    %18 = vector.load %arg10[%c0_18, %c0_19, %c0_20] : memref<1x1x32xf32, #tpu.memory_space<vmem>>, vector<1x1x32xf32>
    %19 = vector.shape_cast %18 : vector<1x1x32xf32> to vector<1x32xf32>
    %20 = vector.broadcast %19 : vector<1x32xf32> to vector<8x32xf32>
    %21 = arith.addf %17, %20 : vector<8x32xf32>
    %c0_21 = arith.constant 0 : index
    %c0_22 = arith.constant 0 : index
    %c0_23 = arith.constant 0 : index
    %22 = vector.load %arg11[%c0_21, %c0_22, %c0_23] : memref<1x32x64xf32, #tpu.memory_space<vmem>>, vector<1x32x64xf32>
    %23 = vector.shape_cast %22 : vector<1x32x64xf32> to vector<32x64xf32>
    %cst_24 = arith.constant dense<0.000000e+00> : vector<8x64xf32>
    %24 = tpu.matmul %6, %23, %cst_24 {dimension_numbers = #tpu.dot_dimension_numbers<[1], [0], [0], [1], [0, 0, 1, 1], [], []>} : vector<8x32xf32>, vector<32x64xf32>, vector<8x64xf32> -> vector<8x64xf32>
    %c0_25 = arith.constant 0 : index
    %c0_26 = arith.constant 0 : index
    %c0_27 = arith.constant 0 : index
    %25 = vector.load %arg12[%c0_25, %c0_26, %c0_27] : memref<1x1x64xf32, #tpu.memory_space<vmem>>, vector<1x1x64xf32>
    %26 = vector.shape_cast %25 : vector<1x1x64xf32> to vector<1x64xf32>
    %27 = vector.broadcast %26 : vector<1x64xf32> to vector<8x64xf32>
    %28 = arith.addf %24, %27 : vector<8x64xf32>
    %29 = vector.extract_strided_slice %14 {offsets = [0, 0], sizes = [8, 32], strides = [1, 1]} : vector<8x96xf32> to vector<8x32xf32>
    %30 = vector.extract_strided_slice %14 {offsets = [0, 32], sizes = [8, 32], strides = [1, 1]} : vector<8x96xf32> to vector<8x32xf32>
    %31 = vector.extract_strided_slice %14 {offsets = [0, 64], sizes = [8, 32], strides = [1, 1]} : vector<8x96xf32> to vector<8x32xf32>
    %32 = tpu.transpose %29, [1, 0] : vector<8x32xf32> -> vector<32x8xf32>
    %33 = vector.shape_cast %32 : vector<32x8xf32> to vector<4x8x8xf32>
    %34 = tpu.transpose %33, [0, 2, 1] : vector<4x8x8xf32> -> vector<4x8x8xf32>
    %35 = tpu.transpose %30, [1, 0] : vector<8x32xf32> -> vector<32x8xf32>
    %36 = vector.shape_cast %35 : vector<32x8xf32> to vector<4x8x8xf32>
    %37 = tpu.transpose %31, [1, 0] : vector<8x32xf32> -> vector<32x8xf32>
    %38 = vector.shape_cast %37 : vector<32x8xf32> to vector<4x8x8xf32>
    %cst_28 = arith.constant dense<0.000000e+00> : vector<4x8x8xf32>
    %39 = tpu.matmul %34, %36, %cst_28 {dimension_numbers = #tpu.dot_dimension_numbers<[2], [1], [1], [2], [0, 0, 0, 1, 1, 2], [0], [0]>} : vector<4x8x8xf32>, vector<4x8x8xf32>, vector<4x8x8xf32> -> vector<4x8x8xf32>
    %40 = vector.shape_cast %7 : vector<8x8xf32> to vector<1x8x8xf32>
    %41 = vector.broadcast %40 : vector<1x8x8xf32> to vector<4x8x8xf32>
    %42 = arith.addf %39, %41 : vector<4x8x8xf32>
    %cst_29 = arith.constant dense<0xFF800000> : vector<4x8xf32>
    %43 = vector.multi_reduction <maximumf>, %42, %cst_29 [2] : vector<4x8x8xf32> to vector<4x8xf32>
    %44 = vector.shape_cast %43 : vector<4x8xf32> to vector<4x8x1xf32>
    %45 = vector.broadcast %44 : vector<4x8x1xf32> to vector<4x8x8xf32>
    %46 = arith.subf %42, %45 : vector<4x8x8xf32>
    %47 = math.exp %46 : vector<4x8x8xf32>
    %cst_30 = arith.constant dense<0.000000e+00> : vector<4x8xf32>
    %48 = vector.multi_reduction <add>, %47, %cst_30 [2] : vector<4x8x8xf32> to vector<4x8xf32>
    %49 = vector.shape_cast %48 : vector<4x8xf32> to vector<4x8x1xf32>
    %50 = vector.broadcast %49 : vector<4x8x1xf32> to vector<4x8x8xf32>
    %51 = arith.divf %47, %50 : vector<4x8x8xf32>
    %cst_31 = arith.constant dense<0.000000e+00> : vector<4x8x8xf32>
    %52 = tpu.matmul %38, %51, %cst_31 {dimension_numbers = #tpu.dot_dimension_numbers<[2], [2], [1], [1], [0, 0, 0, 1, 1, 1], [0], [0]>} : vector<4x8x8xf32>, vector<4x8x8xf32>, vector<4x8x8xf32> -> vector<4x8x8xf32>
    %53 = vector.shape_cast %52 : vector<4x8x8xf32> to vector<32x8xf32>
    %54 = tpu.transpose %53, [1, 0] : vector<32x8xf32> -> vector<8x32xf32>
    %55 = vector.extract_strided_slice %28 {offsets = [0, 0], sizes = [8, 32], strides = [1, 1]} : vector<8x64xf32> to vector<8x32xf32>
    %56 = vector.extract_strided_slice %28 {offsets = [0, 32], sizes = [8, 32], strides = [1, 1]} : vector<8x64xf32> to vector<8x32xf32>
    %57 = tpu.transpose %21, [1, 0] : vector<8x32xf32> -> vector<32x8xf32>
    %58 = vector.shape_cast %57 : vector<32x8xf32> to vector<4x8x8xf32>
    %59 = tpu.transpose %58, [0, 2, 1] : vector<4x8x8xf32> -> vector<4x8x8xf32>
    %60 = tpu.transpose %55, [1, 0] : vector<8x32xf32> -> vector<32x8xf32>
    %61 = vector.shape_cast %60 : vector<32x8xf32> to vector<4x8x8xf32>
    %62 = tpu.transpose %56, [1, 0] : vector<8x32xf32> -> vector<32x8xf32>
    %63 = vector.shape_cast %62 : vector<32x8xf32> to vector<4x8x8xf32>
    %cst_32 = arith.constant dense<0.000000e+00> : vector<4x8x8xf32>
    %64 = tpu.matmul %59, %61, %cst_32 {dimension_numbers = #tpu.dot_dimension_numbers<[2], [1], [1], [2], [0, 0, 0, 1, 1, 2], [0], [0]>} : vector<4x8x8xf32>, vector<4x8x8xf32>, vector<4x8x8xf32> -> vector<4x8x8xf32>
    %cst_33 = arith.constant dense<0xFF800000> : vector<4x8xf32>
    %65 = vector.multi_reduction <maximumf>, %64, %cst_33 [2] : vector<4x8x8xf32> to vector<4x8xf32>
    %66 = vector.shape_cast %65 : vector<4x8xf32> to vector<4x8x1xf32>
    %67 = vector.broadcast %66 : vector<4x8x1xf32> to vector<4x8x8xf32>
    %68 = arith.subf %64, %67 : vector<4x8x8xf32>
    %69 = math.exp %68 : vector<4x8x8xf32>
    %cst_34 = arith.constant dense<0.000000e+00> : vector<4x8xf32>
    %70 = vector.multi_reduction <add>, %69, %cst_34 [2] : vector<4x8x8xf32> to vector<4x8xf32>
    %71 = vector.shape_cast %70 : vector<4x8xf32> to vector<4x8x1xf32>
    %72 = vector.broadcast %71 : vector<4x8x1xf32> to vector<4x8x8xf32>
    %73 = arith.divf %69, %72 : vector<4x8x8xf32>
    %cst_35 = arith.constant dense<0.000000e+00> : vector<4x8x8xf32>
    %74 = tpu.matmul %63, %73, %cst_35 {dimension_numbers = #tpu.dot_dimension_numbers<[2], [2], [1], [1], [0, 0, 0, 1, 1, 1], [0], [0]>} : vector<4x8x8xf32>, vector<4x8x8xf32>, vector<4x8x8xf32> -> vector<4x8x8xf32>
    %75 = vector.shape_cast %74 : vector<4x8x8xf32> to vector<32x8xf32>
    %76 = tpu.transpose %75, [1, 0] : vector<32x8xf32> -> vector<8x32xf32>
    %c0_36 = arith.constant 0 : index
    %c0_37 = arith.constant 0 : index
    %c0_38 = arith.constant 0 : index
    %77 = vector.load %arg15[%c0_36, %c0_37, %c0_38] : memref<1x3x32xf32, #tpu.memory_space<vmem>>, vector<1x3x32xf32>
    %78 = vector.shape_cast %77 : vector<1x3x32xf32> to vector<3x32xf32>
    %c0_39 = arith.constant 0 : index
    %c0_40 = arith.constant 0 : index
    %c0_41 = arith.constant 0 : index
    %79 = vector.load %arg16[%c0_39, %c0_40, %c0_41] : memref<1x3x32xf32, #tpu.memory_space<vmem>>, vector<1x3x32xf32>
    %80 = vector.shape_cast %79 : vector<1x3x32xf32> to vector<3x32xf32>
    %c0_42 = arith.constant 0 : index
    %c0_43 = arith.constant 0 : index
    %c0_44 = arith.constant 0 : index
    %81 = vector.load %arg7[%c0_42, %c0_43, %c0_44] : memref<1x32x32xf32, #tpu.memory_space<vmem>>, vector<1x32x32xf32>
    %82 = vector.shape_cast %81 : vector<1x32x32xf32> to vector<32x32xf32>
    %cst_45 = arith.constant dense<0.000000e+00> : vector<8x32xf32>
    %83 = tpu.matmul %54, %82, %cst_45 {dimension_numbers = #tpu.dot_dimension_numbers<[1], [0], [0], [1], [0, 0, 1, 1], [], []>} : vector<8x32xf32>, vector<32x32xf32>, vector<8x32xf32> -> vector<8x32xf32>
    %c0_46 = arith.constant 0 : index
    %c0_47 = arith.constant 0 : index
    %c0_48 = arith.constant 0 : index
    %84 = vector.load %arg8[%c0_46, %c0_47, %c0_48] : memref<1x1x32xf32, #tpu.memory_space<vmem>>, vector<1x1x32xf32>
    %85 = vector.shape_cast %84 : vector<1x1x32xf32> to vector<1x32xf32>
    %86 = vector.broadcast %85 : vector<1x32xf32> to vector<8x32xf32>
    %87 = arith.addf %83, %86 : vector<8x32xf32>
    %88 = arith.addf %4, %87 : vector<8x32xf32>
    %89 = vector.extract_strided_slice %78 {offsets = [0, 0], sizes = [1, 32], strides = [1, 1]} : vector<3x32xf32> to vector<1x32xf32>
    %90 = vector.shape_cast %89 : vector<1x32xf32> to vector<32xf32>
    %91 = vector.extract_strided_slice %80 {offsets = [0, 0], sizes = [1, 32], strides = [1, 1]} : vector<3x32xf32> to vector<1x32xf32>
    %92 = vector.shape_cast %91 : vector<1x32xf32> to vector<32xf32>
    %cst_49 = arith.constant dense<0.000000e+00> : vector<8xf32>
    %93 = vector.multi_reduction <add>, %88, %cst_49 [1] : vector<8x32xf32> to vector<8xf32>
    %94 = vector.shape_cast %93 : vector<8xf32> to vector<8x1xf32>
    %cst_50 = arith.constant 3.200000e+01 : f32
    %95 = vector.broadcast %cst_50 : f32 to vector<8x1xf32>
    %96 = arith.divf %94, %95 : vector<8x1xf32>
    %97 = vector.broadcast %96 : vector<8x1xf32> to vector<8x32xf32>
    %98 = arith.subf %88, %97 : vector<8x32xf32>
    %99 = arith.mulf %98, %98 : vector<8x32xf32>
    %cst_51 = arith.constant dense<0.000000e+00> : vector<8xf32>
    %100 = vector.multi_reduction <add>, %99, %cst_51 [1] : vector<8x32xf32> to vector<8xf32>
    %101 = vector.shape_cast %100 : vector<8xf32> to vector<8x1xf32>
    %cst_52 = arith.constant 3.200000e+01 : f32
    %102 = vector.broadcast %cst_52 : f32 to vector<8x1xf32>
    %103 = arith.divf %101, %102 : vector<8x1xf32>
    %104 = vector.broadcast %96 : vector<8x1xf32> to vector<8x32xf32>
    %105 = arith.subf %88, %104 : vector<8x32xf32>
    %cst_53 = arith.constant 9.99999974E-6 : f32
    %106 = vector.broadcast %cst_53 : f32 to vector<8x1xf32>
    %107 = arith.addf %103, %106 : vector<8x1xf32>
    %108 = math.rsqrt %107 : vector<8x1xf32>
    %109 = vector.broadcast %108 : vector<8x1xf32> to vector<8x32xf32>
    %110 = arith.mulf %105, %109 : vector<8x32xf32>
    %111 = vector.shape_cast %90 : vector<32xf32> to vector<1x32xf32>
    %112 = vector.broadcast %111 : vector<1x32xf32> to vector<8x32xf32>
    %113 = arith.mulf %110, %112 : vector<8x32xf32>
    %114 = vector.shape_cast %92 : vector<32xf32> to vector<1x32xf32>
    %115 = vector.broadcast %114 : vector<1x32xf32> to vector<8x32xf32>
    %116 = arith.addf %113, %115 : vector<8x32xf32>
    %c0_54 = arith.constant 0 : index
    %c0_55 = arith.constant 0 : index
    %c0_56 = arith.constant 0 : index
    %117 = vector.load %arg13[%c0_54, %c0_55, %c0_56] : memref<1x32x32xf32, #tpu.memory_space<vmem>>, vector<1x32x32xf32>
    %118 = vector.shape_cast %117 : vector<1x32x32xf32> to vector<32x32xf32>
    %cst_57 = arith.constant dense<0.000000e+00> : vector<8x32xf32>
    %119 = tpu.matmul %76, %118, %cst_57 {dimension_numbers = #tpu.dot_dimension_numbers<[1], [0], [0], [1], [0, 0, 1, 1], [], []>} : vector<8x32xf32>, vector<32x32xf32>, vector<8x32xf32> -> vector<8x32xf32>
    %c0_58 = arith.constant 0 : index
    %c0_59 = arith.constant 0 : index
    %c0_60 = arith.constant 0 : index
    %120 = vector.load %arg14[%c0_58, %c0_59, %c0_60] : memref<1x1x32xf32, #tpu.memory_space<vmem>>, vector<1x1x32xf32>
    %121 = vector.shape_cast %120 : vector<1x1x32xf32> to vector<1x32xf32>
    %122 = vector.broadcast %121 : vector<1x32xf32> to vector<8x32xf32>
    %123 = arith.addf %119, %122 : vector<8x32xf32>
    %124 = arith.addf %116, %123 : vector<8x32xf32>
    %125 = vector.extract_strided_slice %78 {offsets = [1, 0], sizes = [1, 32], strides = [1, 1]} : vector<3x32xf32> to vector<1x32xf32>
    %126 = vector.shape_cast %125 : vector<1x32xf32> to vector<32xf32>
    %127 = vector.extract_strided_slice %80 {offsets = [1, 0], sizes = [1, 32], strides = [1, 1]} : vector<3x32xf32> to vector<1x32xf32>
    %128 = vector.shape_cast %127 : vector<1x32xf32> to vector<32xf32>
    %cst_61 = arith.constant dense<0.000000e+00> : vector<8xf32>
    %129 = vector.multi_reduction <add>, %124, %cst_61 [1] : vector<8x32xf32> to vector<8xf32>
    %130 = vector.shape_cast %129 : vector<8xf32> to vector<8x1xf32>
    %cst_62 = arith.constant 3.200000e+01 : f32
    %131 = vector.broadcast %cst_62 : f32 to vector<8x1xf32>
    %132 = arith.divf %130, %131 : vector<8x1xf32>
    %133 = vector.broadcast %132 : vector<8x1xf32> to vector<8x32xf32>
    %134 = arith.subf %124, %133 : vector<8x32xf32>
    %135 = arith.mulf %134, %134 : vector<8x32xf32>
    %cst_63 = arith.constant dense<0.000000e+00> : vector<8xf32>
    %136 = vector.multi_reduction <add>, %135, %cst_63 [1] : vector<8x32xf32> to vector<8xf32>
    %137 = vector.shape_cast %136 : vector<8xf32> to vector<8x1xf32>
    %cst_64 = arith.constant 3.200000e+01 : f32
    %138 = vector.broadcast %cst_64 : f32 to vector<8x1xf32>
    %139 = arith.divf %137, %138 : vector<8x1xf32>
    %140 = vector.broadcast %132 : vector<8x1xf32> to vector<8x32xf32>
    %141 = arith.subf %124, %140 : vector<8x32xf32>
    %cst_65 = arith.constant 9.99999974E-6 : f32
    %142 = vector.broadcast %cst_65 : f32 to vector<8x1xf32>
    %143 = arith.addf %139, %142 : vector<8x1xf32>
    %144 = math.rsqrt %143 : vector<8x1xf32>
    %145 = vector.broadcast %144 : vector<8x1xf32> to vector<8x32xf32>
    %146 = arith.mulf %141, %145 : vector<8x32xf32>
    %147 = vector.shape_cast %126 : vector<32xf32> to vector<1x32xf32>
    %148 = vector.broadcast %147 : vector<1x32xf32> to vector<8x32xf32>
    %149 = arith.mulf %146, %148 : vector<8x32xf32>
    %150 = vector.shape_cast %128 : vector<32xf32> to vector<1x32xf32>
    %151 = vector.broadcast %150 : vector<1x32xf32> to vector<8x32xf32>
    %152 = arith.addf %149, %151 : vector<8x32xf32>
    %c0_66 = arith.constant 0 : index
    %c0_67 = arith.constant 0 : index
    %c0_68 = arith.constant 0 : index
    %153 = vector.load %arg17[%c0_66, %c0_67, %c0_68] : memref<1x32x64xf32, #tpu.memory_space<vmem>>, vector<1x32x64xf32>
    %154 = vector.shape_cast %153 : vector<1x32x64xf32> to vector<32x64xf32>
    %cst_69 = arith.constant dense<0.000000e+00> : vector<8x64xf32>
    %155 = tpu.matmul %152, %154, %cst_69 {dimension_numbers = #tpu.dot_dimension_numbers<[1], [0], [0], [1], [0, 0, 1, 1], [], []>} : vector<8x32xf32>, vector<32x64xf32>, vector<8x64xf32> -> vector<8x64xf32>
    %c0_70 = arith.constant 0 : index
    %c0_71 = arith.constant 0 : index
    %c0_72 = arith.constant 0 : index
    %156 = vector.load %arg18[%c0_70, %c0_71, %c0_72] : memref<1x1x64xf32, #tpu.memory_space<vmem>>, vector<1x1x64xf32>
    %157 = vector.shape_cast %156 : vector<1x1x64xf32> to vector<1x64xf32>
    %158 = vector.broadcast %157 : vector<1x64xf32> to vector<8x64xf32>
    %159 = arith.addf %155, %158 : vector<8x64xf32>
    %cst_73 = arith.constant 0.000000e+00 : f32
    %160 = vector.broadcast %cst_73 : f32 to vector<8x64xf32>
    %161 = arith.maximumf %159, %160 : vector<8x64xf32>
    %c0_74 = arith.constant 0 : index
    %c0_75 = arith.constant 0 : index
    %c0_76 = arith.constant 0 : index
    %162 = vector.load %arg19[%c0_74, %c0_75, %c0_76] : memref<1x64x32xf32, #tpu.memory_space<vmem>>, vector<1x64x32xf32>
    %163 = vector.shape_cast %162 : vector<1x64x32xf32> to vector<64x32xf32>
    %cst_77 = arith.constant dense<0.000000e+00> : vector<8x32xf32>
    %164 = tpu.matmul %161, %163, %cst_77 {dimension_numbers = #tpu.dot_dimension_numbers<[1], [0], [0], [1], [0, 0, 1, 1], [], []>} : vector<8x64xf32>, vector<64x32xf32>, vector<8x32xf32> -> vector<8x32xf32>
    %c0_78 = arith.constant 0 : index
    %c0_79 = arith.constant 0 : index
    %c0_80 = arith.constant 0 : index
    %165 = vector.load %arg20[%c0_78, %c0_79, %c0_80] : memref<1x1x32xf32, #tpu.memory_space<vmem>>, vector<1x1x32xf32>
    %166 = vector.shape_cast %165 : vector<1x1x32xf32> to vector<1x32xf32>
    %167 = vector.broadcast %166 : vector<1x32xf32> to vector<8x32xf32>
    %168 = arith.addf %164, %167 : vector<8x32xf32>
    %169 = arith.addf %152, %168 : vector<8x32xf32>
    %170 = vector.extract_strided_slice %78 {offsets = [2, 0], sizes = [1, 32], strides = [1, 1]} : vector<3x32xf32> to vector<1x32xf32>
    %171 = vector.shape_cast %170 : vector<1x32xf32> to vector<32xf32>
    %172 = vector.extract_strided_slice %80 {offsets = [2, 0], sizes = [1, 32], strides = [1, 1]} : vector<3x32xf32> to vector<1x32xf32>
    %173 = vector.shape_cast %172 : vector<1x32xf32> to vector<32xf32>
    %cst_81 = arith.constant dense<0.000000e+00> : vector<8xf32>
    %174 = vector.multi_reduction <add>, %169, %cst_81 [1] : vector<8x32xf32> to vector<8xf32>
    %175 = vector.shape_cast %174 : vector<8xf32> to vector<8x1xf32>
    %cst_82 = arith.constant 3.200000e+01 : f32
    %176 = vector.broadcast %cst_82 : f32 to vector<8x1xf32>
    %177 = arith.divf %175, %176 : vector<8x1xf32>
    %178 = vector.broadcast %177 : vector<8x1xf32> to vector<8x32xf32>
    %179 = arith.subf %169, %178 : vector<8x32xf32>
    %180 = arith.mulf %179, %179 : vector<8x32xf32>
    %cst_83 = arith.constant dense<0.000000e+00> : vector<8xf32>
    %181 = vector.multi_reduction <add>, %180, %cst_83 [1] : vector<8x32xf32> to vector<8xf32>
    %182 = vector.shape_cast %181 : vector<8xf32> to vector<8x1xf32>
    %cst_84 = arith.constant 3.200000e+01 : f32
    %183 = vector.broadcast %cst_84 : f32 to vector<8x1xf32>
    %184 = arith.divf %182, %183 : vector<8x1xf32>
    %185 = vector.broadcast %177 : vector<8x1xf32> to vector<8x32xf32>
    %186 = arith.subf %169, %185 : vector<8x32xf32>
    %cst_85 = arith.constant 9.99999974E-6 : f32
    %187 = vector.broadcast %cst_85 : f32 to vector<8x1xf32>
    %188 = arith.addf %184, %187 : vector<8x1xf32>
    %189 = math.rsqrt %188 : vector<8x1xf32>
    %190 = vector.broadcast %189 : vector<8x1xf32> to vector<8x32xf32>
    %191 = arith.mulf %186, %190 : vector<8x32xf32>
    %192 = vector.shape_cast %171 : vector<32xf32> to vector<1x32xf32>
    %193 = vector.broadcast %192 : vector<1x32xf32> to vector<8x32xf32>
    %194 = arith.mulf %191, %193 : vector<8x32xf32>
    %195 = vector.shape_cast %173 : vector<32xf32> to vector<1x32xf32>
    %196 = vector.broadcast %195 : vector<1x32xf32> to vector<8x32xf32>
    %197 = arith.addf %194, %196 : vector<8x32xf32>
    %198 = vector.shape_cast %197 : vector<8x32xf32> to vector<1x8x32xf32>
    %c0_86 = arith.constant 0 : index
    %c0_87 = arith.constant 0 : index
    %c0_88 = arith.constant 0 : index
    %199 = vector.load %arg21[%c0_86, %c0_87, %c0_88] : memref<1x8x32xf32, #tpu.memory_space<vmem>>, vector<1x8x32xf32>
    tpu.vector_store %arg21[%c0_86, %c0_87, %c0_88], %198 {strides = array<i32>} : memref<1x8x32xf32, #tpu.memory_space<vmem>>, vector<1x8x32xf32>,
    return
  }
  func.func @transform_0(%arg0: i32, %arg1: i32) -> (i32, i32) {
    %c0_i32 = arith.constant 0 : i32
    %c0_i32_0 = arith.constant 0 : i32
    %c0_i32_1 = arith.constant 0 : i32
    return %c0_i32, %c0_i32_0 : i32, i32
  }
  func.func @transform_1(%arg0: i32, %arg1: i32) -> (i32, i32, i32) {
    %c0_i32 = arith.constant 0 : i32
    %c0_i32_0 = arith.constant 0 : i32
    %c0_i32_1 = arith.constant 0 : i32
    return %arg0, %c0_i32, %c0_i32_0 : i32, i32, i32
  }
  func.func @transform_2(%arg0: i32, %arg1: i32) -> (i32, i32, i32) {
    %c0_i32 = arith.constant 0 : i32
    %c0_i32_0 = arith.constant 0 : i32
    %c0_i32_1 = arith.constant 0 : i32
    return %arg0, %c0_i32, %c0_i32_0 : i32, i32, i32
  }
  func.func @transform_3(%arg0: i32, %arg1: i32) -> (i32, i32, i32) {
    %c0_i32 = arith.constant 0 : i32
    %c0_i32_0 = arith.constant 0 : i32
    %c0_i32_1 = arith.constant 0 : i32
    return %arg1, %c0_i32, %c0_i32_0 : i32, i32, i32
  }
  func.func @transform_4(%arg0: i32, %arg1: i32) -> (i32, i32, i32) {
    %c0_i32 = arith.constant 0 : i32
    %c0_i32_0 = arith.constant 0 : i32
    %c0_i32_1 = arith.constant 0 : i32
    return %arg1, %c0_i32, %c0_i32_0 : i32, i32, i32
  }
  func.func @transform_5(%arg0: i32, %arg1: i32) -> (i32, i32, i32) {
    %c0_i32 = arith.constant 0 : i32
    %c0_i32_0 = arith.constant 0 : i32
    %c0_i32_1 = arith.constant 0 : i32
    return %arg1, %c0_i32, %c0_i32_0 : i32, i32, i32
  }
  func.func @transform_6(%arg0: i32, %arg1: i32) -> (i32, i32, i32) {
    %c0_i32 = arith.constant 0 : i32
    %c0_i32_0 = arith.constant 0 : i32
    %c0_i32_1 = arith.constant 0 : i32
    return %arg1, %c0_i32, %c0_i32_0 : i32, i32, i32
  }
  func.func @transform_7(%arg0: i32, %arg1: i32) -> (i32, i32, i32) {
    %c0_i32 = arith.constant 0 : i32
    %c0_i32_0 = arith.constant 0 : i32
    %c0_i32_1 = arith.constant 0 : i32
    return %arg1, %c0_i32, %c0_i32_0 : i32, i32, i32
  }
  func.func @transform_8(%arg0: i32, %arg1: i32) -> (i32, i32, i32) {
    %c0_i32 = arith.constant 0 : i32
    %c0_i32_0 = arith.constant 0 : i32
    %c0_i32_1 = arith.constant 0 : i32
    return %arg1, %c0_i32, %c0_i32_0 : i32, i32, i32
  }
  func.func @transform_9(%arg0: i32, %arg1: i32) -> (i32, i32, i32) {
    %c0_i32 = arith.constant 0 : i32
    %c0_i32_0 = arith.constant 0 : i32
    %c0_i32_1 = arith.constant 0 : i32
    return %arg1, %c0_i32, %c0_i32_0 : i32, i32, i32
  }
  func.func @transform_10(%arg0: i32, %arg1: i32) -> (i32, i32, i32) {
    %c0_i32 = arith.constant 0 : i32
    %c0_i32_0 = arith.constant 0 : i32
    %c0_i32_1 = arith.constant 0 : i32
    return %arg1, %c0_i32, %c0_i32_0 : i32, i32, i32
  }
  func.func @transform_11(%arg0: i32, %arg1: i32) -> (i32, i32, i32) {
    %c0_i32 = arith.constant 0 : i32
    %c0_i32_0 = arith.constant 0 : i32
    %c0_i32_1 = arith.constant 0 : i32
    return %arg1, %c0_i32, %c0_i32_0 : i32, i32, i32
  }
  func.func @transform_12(%arg0: i32, %arg1: i32) -> (i32, i32, i32) {
    %c0_i32 = arith.constant 0 : i32
    %c0_i32_0 = arith.constant 0 : i32
    %c0_i32_1 = arith.constant 0 : i32
    return %arg1, %c0_i32, %c0_i32_0 : i32, i32, i32
  }
  func.func @transform_13(%arg0: i32, %arg1: i32) -> (i32, i32, i32) {
    %c0_i32 = arith.constant 0 : i32
    %c0_i32_0 = arith.constant 0 : i32
    %c0_i32_1 = arith.constant 0 : i32
    return %arg1, %c0_i32, %c0_i32_0 : i32, i32, i32
  }
  func.func @transform_14(%arg0: i32, %arg1: i32) -> (i32, i32, i32) {
    %c0_i32 = arith.constant 0 : i32
    %c0_i32_0 = arith.constant 0 : i32
    %c0_i32_1 = arith.constant 0 : i32
    return %arg1, %c0_i32, %c0_i32_0 : i32, i32, i32
  }
  func.func @transform_15(%arg0: i32, %arg1: i32) -> (i32, i32, i32) {
    %c0_i32 = arith.constant 0 : i32
    %c0_i32_0 = arith.constant 0 : i32
    %c0_i32_1 = arith.constant 0 : i32
    return %arg1, %c0_i32, %c0_i32_0 : i32, i32, i32
  }
  func.func @transform_16(%arg0: i32, %arg1: i32) -> (i32, i32, i32) {
    %c0_i32 = arith.constant 0 : i32
    %c0_i32_0 = arith.constant 0 : i32
    %c0_i32_1 = arith.constant 0 : i32
    return %arg1, %c0_i32, %c0_i32_0 : i32, i32, i32
  }
  func.func @transform_17(%arg0: i32, %arg1: i32) -> (i32, i32, i32) {
    %c0_i32 = arith.constant 0 : i32
    %c0_i32_0 = arith.constant 0 : i32
    %c0_i32_1 = arith.constant 0 : i32
    return %arg1, %c0_i32, %c0_i32_0 : i32, i32, i32
  }
  func.func @transform_18(%arg0: i32, %arg1: i32) -> (i32, i32, i32) {
    %c0_i32 = arith.constant 0 : i32
    %c0_i32_0 = arith.constant 0 : i32
    %c0_i32_1 = arith.constant 0 : i32
    return %arg1, %c0_i32, %c0_i32_0 : i32, i32, i32
  }
  func.func @transform_19(%arg0: i32, %arg1: i32) -> (i32, i32, i32) {
    %c0_i32 = arith.constant 0 : i32
    %c0_i32_0 = arith.constant 0 : i32
    %c0_i32_1 = arith.constant 0 : i32
    return %arg0, %c0_i32, %c0_i32_0 : i32, i32, i32
  }
}

</mosaic_0001>

<bundles_post_ra>
// kernel: tpu_custom_call.1
= control target key start
LH: loop header
LB: loop body
LE: loop exit
PB: predicated region body
PF: predicated region fallthrough
CT: control target
= control target key end

     0   :  { %s5747_s0 = inlined_call_operand.vmem [shape: f32[8,8], index: 0, kind: input, shape index: {}]   ;;  %s5748_s1 = inlined_call_operand.vmem [shape: f32[2,8,32], index: 1, kind: input, shape index: {}]   ;;  %s5749_s2 = inlined_call_operand.hbm [shape: f32[2,8,32], index: 2, kind: input, shape index: {}]   ;;  %s5750_s3 = inlined_call_operand.vmem [shape: f32[2,32,96], index: 3, kind: input, shape index: {}]   ;;  %s5751_s4 = inlined_call_operand.vmem [shape: f32[2,1,96], index: 4, kind: input, shape index: {}]   ;;  %s5752_s5 = inlined_call_operand.vmem [shape: f32[2,32,32], index: 5, kind: input, shape index: {}]   ;;  %s5753_s6 = inlined_call_operand.vmem [shape: f32[2,1,32], index: 6, kind: input, shape index: {}]   ;;  %s5754_s7 = inlined_call_operand.vmem [shape: f32[2,32,32], index: 7, kind: input, shape index: {}]   ;;  %s5755_s8 = inlined_call_operand.hbm [shape: f32[2,1,32], index: 8, kind: input, shape index: {}]   ;;  %s5756_s9 = inlined_call_operand.hbm [shape: f32[2,32,64], index: 9, kind: input, shape index: {}]   ;;  %s5757_s10 = inlined_call_operand.hbm [shape: f32[2,1,64], index: 10, kind: input, shape index: {}]   ;;  %s5758_s11 = inlined_call_operand.hbm [shape: f32[2,32,32], index: 11, kind: input, shape index: {}]   ;;  %s5759_s12 = inlined_call_operand.hbm [shape: f32[2,1,32], index: 12, kind: input, shape index: {}]   ;;  %s5760_s13 = inlined_call_operand.vmem [shape: f32[2,3,32], index: 13, kind: input, shape index: {}]   ;;  %s5761_s14 = inlined_call_operand.vmem [shape: f32[2,3,32], index: 14, kind: input, shape index: {}]   ;;  %s5762_s15 = inlined_call_operand.hbm [shape: f32[2,32,64], index: 15, kind: input, shape index: {}]   ;;  %s5763_s16 = inlined_call_operand.hbm [shape: f32[2,1,64], index: 16, kind: input, shape index: {}]   ;;  %s5764_s17 = inlined_call_operand.vmem [shape: f32[2,64,32], index: 17, kind: input, shape index: {}]   ;;  %s5765_s18 = inlined_call_operand.vmem [shape: f32[2,1,32], index: 18, kind: input, shape index: {}]   ;;  %s5766_s19 = inlined_call_operand.hbm [shape: f32[2,8,32], index: 19, kind: output, shape index: {}]  }
   0x1   :  { %5798 = sst [smem:[#allocation41_spill]] %s5747_s0 }
   0x2   :  { %5799 = sst [smem:[#allocation42_spill]] %s5748_s1 }
   0x3   :  { %5800 = sst [smem:[#allocation43_spill]] %s5749_s2 }
   0x4   :  { %5801 = sst [smem:[#allocation44_spill]] %s5750_s3 }
   0x5   :  { %5802 = sst [smem:[#allocation45_spill]] %s5751_s4 }
   0x6   :  { %5803 = sst [smem:[#allocation46_spill]] %s5752_s5 }
   0x7   :  { %5804 = sst [smem:[#allocation47_spill]] %s5753_s6 }
   0x8   :  { %5805 = sst [smem:[#allocation48_spill]] %s5754_s7 }
   0x9   :  { %5806 = sst [smem:[#allocation49_spill]] %s5755_s8 }
   0xa   :  { %5807 = sst [smem:[#allocation50_spill]] %s5756_s9 }
   0xb   :  { %5808 = sst [smem:[#allocation51_spill]] %s5757_s10 }
   0xc   :  { %5809 = sst [smem:[#allocation52_spill]] %s5758_s11 }
   0xd   :  { %5810 = sst [smem:[#allocation53_spill]] %s5759_s12 }
   0xe   :  { %5811 = sst [smem:[#allocation54_spill]] %s5760_s13 }
   0xf   :  { %5812 = sst [smem:[#allocation55_spill]] %s5761_s14 }
  0x10   :  { %5813 = sst [smem:[#allocation56_spill]] %s5762_s15 }
  0x11   :  { %5814 = sst [smem:[#allocation57_spill]] %s5763_s16 }
  0x12   :  { %5815 = sst [smem:[#allocation58_spill]] %s5764_s17 }
  0x13   :  { %5816 = sst [smem:[#allocation59_spill]] %s5765_s18 }
  0x14   :  { %5817 = sst [smem:[#allocation60_spill]] %s5766_s19 }
  0x15   :  { %24 = vsyncpa [#allocation3], 0 }
  0x16   :  { %26 = vsyncpa [#allocation3 + $0x1], 0 }
  0x17   :  { %27 = vsyncpa [#allocation6], 0 }
  0x18   :  { %29 = vsyncpa [#allocation6 + $0x1], 0 }
  0x19   :  { %30 = vsyncpa [#allocation9], 0 }
  0x1a   :  { %32 = vsyncpa [#allocation9 + $0x1], 0 }
  0x1b   :  { %33 = vsyncpa [#allocation12], 0 }
  0x1c   :  { %35 = vsyncpa [#allocation12 + $0x1], 0 }
  0x1d   :  { %36 = vsyncpa [#allocation15], 0 }
  0x1e   :  { %38 = vsyncpa [#allocation15 + $0x1], 0 }
  0x1f   :  { %39 = vsyncpa [#allocation4], 0 }
  0x20   :  { %41 = vsyncpa [#allocation4 + $0x1], 0  ;;  %s4926_s0 = smov 0   ;;  %s4928_s30 = smov 0  }
  0x21   :  { %s4930_s20 = smov 0   ;;  %s4932_s21 = smov 0  }
  0x22   :  { %s4934_s1 = smov 0   ;;  %s4936_s22 = smov 0  }
  0x23   :  { %s4938_s2 = smov 0   ;;  %s4940_s23 = smov 0  }
  0x24   :  { %s4942_s24 = smov 0   ;;  %s4944_s25 = smov 0  }
  0x25   :  { %s4946_s3 = smov 0  }
  0x26 LB: > { %5818 = sst [smem:[#allocation23_spill]] %s4772_s30  ;;  %s56_s26 = sadd.s32 1, %s4800_s24  ;;  %s4808_s3 = sphi %s4946_s3, %s47_s3   ;;  %s4804_s25 = sphi %s4944_s25, %s5915_s25   ;;  %s4800_s24 = sphi %s4942_s24, %s5914_s24   ;;  %s4796_s23 = sphi %s4940_s23, %s5913_s23   ;;  %s4792_s2 = sphi %s4938_s2, %s5912_s2   ;;  %s4788_s22 = sphi %s4936_s22, %s5911_s22   ;;  %s4784_s1 = sphi %s4934_s1, %s5910_s1   ;;  %s4780_s21 = sphi %s4932_s21, %s5909_s21   ;;  %s4776_s20 = sphi %s4930_s20, %s5908_s20   ;;  %s4772_s30 = sphi %s4928_s30, %s5907_s30   ;;  %s4768_s0 = sphi %s4926_s0, %s5906_s0  }
  0x27   : > { %5819 = sst [smem:[#allocation24_spill]] %s4776_s20  ;;  %p5773_p0 = scmp.eq.s32.totalorder %s4808_s3, 0 }
  0x28   : > { %5820 = sst [smem:[#allocation25_spill]] %s4780_s21  ;;  %p4983_p1 = scmp.ge.s32.totalorder %s56_s26, 2 }
  0x29   : > { %5821 = sst [smem:[#allocation26_spill]] %s4784_s1  ;;  %s269_s28 = sadd.s32 1, %s4776_s20 }
  0x2a   : > { %5822 = sst [smem:[#allocation27_spill]] %s4788_s22  ;;  %p276_p2 = scmp.ne.s32.totalorder %s4776_s20, %s4772_s30 }
  0x2b   : > { %5823 = sst [smem:[#allocation28_spill]] %s4792_s2  ;;  %s5917_s26 = smov (%p4983_p1, %s56_s26), 0 }
  0x2c   : > { %5824 = sst [smem:[#allocation29_spill]] %s4796_s23  ;;  %p278_p3 = por %p276_p2, %p5773_p0 }
  0x2d   : > { %5825 = sst [smem:[#allocation30_spill]] %s4800_s24  ;;  %p5772_p4 = scmp.lt.s32.totalorder %s4808_s3, 4 }
  0x2e   : > { %5826 = sst [smem:[#allocation31_spill]] %s4804_s25  ;;  %s266_s29 = ssub.s32 %s4800_s24, %s5917_s26 }
  0x2f   : > { %5827 = sst [smem:[#allocation32_spill]] %s4808_s3  ;;  %s5000_s19 = sand.u32 1, %s4808_s3  }
  0x30   : > { %s5828_s27 = scalar_select %p4983_p1, 1, 0 }
  0x31   : > { %5829 = sst [smem:[#allocation33_spill]] %s5917_s26  ;;  %p267_p5 = scmp.eq.s32.totalorder %s266_s29, 0 }
  0x32   : > { %s5003_s17 = sand.u32 1, %s4776_s20   ;;  %s5006_s18 = sshll.u32 %s4800_s24, 4 }
  0x33   : > { %s5009_s14 = scalar_select %p267_p5, %s4776_s20, %s269_s28  }
  0x34   : > { %s5831_s8 = sld [smem:[#allocation49_spill]]  ;;  %s659_s26 = scalar_lea.vmem [#allocation5], %s5003_s17 }
  0x35   : > { %5830 = sst [smem:[#allocation34_spill]] %s5009_s14  ;;  %s666_s5 = sshll.u32 %s659_s26, 4  ;;  %s5024_s5 = int_to_ptr.vmem [resolvable:$true] %s666_s5 }
  0x36   : > { %p5020_p6 = pnand %p5772_p4, %p278_p3 }
  0x38   : > { %s5832_s29 = scalar_select %p5020_p6, 1, 0 }
  0x39   : > { %p5033_p10 = pneg %p5020_p6 }
  0x3a   : > { %s5015_s6 = scalar_lea.hbm %s5831_s8, %s5006_s18  ;;  %s4435_s20 = scalar_lea.hbm %s5831_s8, 32 }
  0x3b   : > { %s4430_s7 = scalar_lea.hbm %s5015_s6, 16  ;;  %p4436_p13 = scmp.lt.u32.totalorder %s5015_s6, %s5831_s8 }
  0x3c   : > { %p4431_p9 = scmp.ne.s32.totalorder %s5015_s6, %s4430_s7  ;;  %p4437_p2 = scmp.lt.u32.totalorder %s4435_s20, %s4430_s7 }
  0x3d   : > { %p4439_p5 = scmp.lt.u32.totalorder %s4430_s7, %s5015_s6 }
  0x3e   : > { %p4433_p11 = pnand %p5033_p10, %p4431_p9  ;;  %p4438_p3 = por %p4437_p2, %p4436_p13 }
  0x40   : > { %p4434_p12 = pneg %p4433_p11  ;;  %p4440_p4 = por %p4439_p5, %p4438_p3 }
  0x42   : > { %p4441_p0 = pnand %p4440_p4, %p4434_p12 }
  0x44   : > { %4444 = shalt.err (!%p4441_p0)
}
  0x45   : > { %s4445_s28 = scalar_lea.vmem %s5024_s5, 16  ;;  %s4810_s14 = smov [#allocation5]  }
  0x46   : > { %p4446_p9 = scmp.ne.s32.totalorder %s5024_s5, %s4445_s28  ;;  %s4450_s26 = sshll.u32 %s4810_s14, 4  ;;  %s4451_s26 = int_to_ptr.vmem [resolvable:$false] %s4450_s26 }
  0x47   : > { %s4452_s4 = scalar_lea.vmem %s4451_s26, 32  ;;  %p4453_p8 = scmp.lt.s32.totalorder %s5024_s5, %s4451_s26 }
  0x48   : > { %p4448_p11 = pnand %p4446_p9, %p5033_p10  ;;  %p4454_p1 = scmp.lt.s32.totalorder %s4452_s4, %s4445_s28 }
  0x4a   : > { %p4449_p7 = pneg %p4448_p11  ;;  %p4455_p13 = por %p4454_p1, %p4453_p8 }
  0x4c   : > { %p4456_p2 = pnand %p4455_p13, %p4449_p7 }
  0x4e   : > { %4459 = shalt.err (!%p4456_p2)
}
  0x4f   : > { %s5834_s20 = scalar_lea.sflag [#allocation6], %s5000_s19  ;;  %p5835_p0 = scmp.lt.s32.totalorder %s4808_s3, 5 }
  0x50   : > { %4272 = dma.hbm_to_vmem [thread:$0]  (!%p5020_p6), %s5015_s6, 16, %s5024_s5, %s5834_s20  }
  0x51   : > { %p5836_p4 = scmp.ge.s32.totalorder %s4808_s3, 1  ;;  %s5839_s10 = sld [smem:[#allocation51_spill]] }
  0x52   : > { %s697_s26 = scalar_lea.vmem [#allocation8], %s5003_s17 }
  0x53   : > { %p5062_p12 = pnand %p5836_p4, %p5835_p0  ;;  %s704_s4 = sshll.u32 %s697_s26, 4  ;;  %s705_s4 = int_to_ptr.vmem [resolvable:$true] %s704_s4 }
  0x55   : > { %s5837_s2 = scalar_select %p5062_p12, 1, 0 }
  0x57   : > { %5838 = sst [smem:[#allocation35_spill]] %s5837_s2  ;;  %s5070_s14 = scalar_lea.hbm %s5839_s10, %s5006_s18 }
  0x58   : > { %s4460_s5 = scalar_lea.hbm %s5070_s14, 16  ;;  %s4465_s23 = scalar_lea.hbm %s5839_s10, 32 }
  0x59   : > { %p4461_p1 = scmp.ne.s32.totalorder %s5070_s14, %s4460_s5  ;;  %p4466_p3 = scmp.lt.u32.totalorder %s5070_s14, %s5839_s10 }
  0x5a   : > { %p4467_p5 = scmp.lt.u32.totalorder %s4465_s23, %s4460_s5  ;;  %p4469_p11 = scmp.lt.u32.totalorder %s4460_s5, %s5070_s14 }
  0x5b   : > { %p4463_p7 = pnand %p4461_p1, %p5033_p10 }
  0x5c   : > { %p4468_p9 = por %p4467_p5, %p4466_p3 }
  0x5d   : > { %p4464_p8 = pneg %p4463_p7 }
  0x5e   : > { %p4470_p13 = por %p4469_p11, %p4468_p9 }
  0x60   : > { %p4471_p2 = pnand %p4470_p13, %p4464_p8 }
  0x62   : > { %4474 = shalt.err (!%p4471_p2)
}
  0x63   : > { %s4475_s26 = scalar_lea.vmem %s705_s4, 16  ;;  %s4811_s8 = smov [#allocation8]  }
  0x64   : > { %p4476_p0 = scmp.ne.s32.totalorder %s705_s4, %s4475_s26  ;;  %s4480_s2 = sshll.u32 %s4811_s8, 4  ;;  %s4481_s2 = int_to_ptr.vmem [resolvable:$false] %s4480_s2 }
  0x65   : > { %s4482_s6 = scalar_lea.vmem %s4481_s2, 32  ;;  %p4483_p7 = scmp.lt.s32.totalorder %s705_s4, %s4481_s2 }
  0x66   : > { %p4478_p4 = pnand %p4476_p0, %p5033_p10  ;;  %p4484_p12 = scmp.lt.s32.totalorder %s4482_s6, %s4475_s26 }
  0x68   : > { %p4479_p1 = pneg %p4478_p4  ;;  %p4485_p6 = por %p4484_p12, %p4483_p7 }
  0x6a   : > { %p4486_p3 = pnand %p4485_p6, %p4479_p1 }
  0x6c   : > { %4489 = shalt.err (!%p4486_p3)
}
  0x6d   : > { %p5840_p5 = scmp.ne.s32.totalorder %s5832_s29, 0  ;;  %s5841_s23 = scalar_lea.sflag [#allocation9], %s5000_s19 }
  0x6e   : > { %s5842_s12 = sld [smem:[#allocation53_spill]]  ;;  %s735_s2 = scalar_lea.vmem [#allocation11], %s5003_s17 }
  0x6f   : > { %4278 = dma.hbm_to_vmem [thread:$0]  (!%p5840_p5), %s5070_s14, 16, %s705_s4, %s5841_s23  }
  0x70   : > { %s742_s28 = sshll.u32 %s735_s2, 4  ;;  %s743_s28 = int_to_ptr.vmem [resolvable:$true] %s742_s28 }
  0x74   : > { %s5097_s8 = scalar_lea.hbm %s5842_s12, %s5006_s18  ;;  %s4495_s4 = scalar_lea.hbm %s5842_s12, 32 }
  0x75   : > { %s4490_s26 = scalar_lea.hbm %s5097_s8, 16  ;;  %p4496_p9 = scmp.lt.u32.totalorder %s5097_s8, %s5842_s12 }
  0x76   : > { %p4491_p6 = scmp.ne.s32.totalorder %s5097_s8, %s4490_s26  ;;  %p4497_p11 = scmp.lt.u32.totalorder %s4495_s4, %s4490_s26 }
  0x77   : > { %p4499_p2 = scmp.lt.u32.totalorder %s4490_s26, %s5097_s8 }
  0x78   : > { %p4493_p12 = pnand %p4491_p6, %p5033_p10  ;;  %p4498_p13 = por %p4497_p11, %p4496_p9 }
  0x7a   : > { %p4494_p8 = pneg %p4493_p12  ;;  %p4500_p0 = por %p4499_p2, %p4498_p13 }
  0x7c   : > { %p4501_p4 = pnand %p4500_p0, %p4494_p8 }
  0x7e   : > { %4504 = shalt.err (!%p4501_p4)
}
  0x7f   : > { %s4505_s20 = scalar_lea.vmem %s743_s28, 16  ;;  %s4812_s2 = smov [#allocation11]  }
  0x80   : > { %p4506_p1 = scmp.ne.s32.totalorder %s743_s28, %s4505_s20  ;;  %s4510_s7 = sshll.u32 %s4812_s2, 4  ;;  %s4511_s7 = int_to_ptr.vmem [resolvable:$false] %s4510_s7 }
  0x81   : > { %s4512_s6 = scalar_lea.vmem %s4511_s7, 32  ;;  %p4513_p6 = scmp.lt.s32.totalorder %s743_s28, %s4511_s7 }
  0x82   : > { %p4508_p7 = pnand %p4506_p1, %p5033_p10  ;;  %p4514_p12 = scmp.lt.s32.totalorder %s4512_s6, %s4505_s20 }
  0x84   : > { %p4509_p3 = pneg %p4508_p7  ;;  %p4515_p5 = por %p4514_p12, %p4513_p6 }
  0x86   : > { %p4516_p9 = pnand %p4515_p5, %p4509_p3 }
  0x88   : > { %4519 = shalt.err (!%p4516_p9)
}
  0x89   : > { %p5843_p11 = scmp.ne.s32.totalorder %s5832_s29, 0  ;;  %s5844_s26 = scalar_lea.sflag [#allocation12], %s5000_s19 }
  0x8a   : > { %s5121_s7 = sadd.s32 4294967295, %s4808_s3   ;;  %s3879_s14 = sadd.s32 4294967294, %s4808_s3  }
  0x8b   : > { %4284 = dma.hbm_to_vmem [thread:$0]  (!%p5843_p11), %s5097_s8, 16, %s743_s28, %s5844_s26  }
  0x8c   : > { %s59_s4 = sadd.s32 1, %s4804_s25  ;;  %p5845_p5 = scmp.ne.s32.totalorder %s5828_s27, 0 }
  0x8d   : > { %s113_s23 = sadd.s32 1, %s4788_s22  ;;  %p120_p8 = scmp.ne.s32.totalorder %s4788_s22, %s4784_s1 }
  0x8e   : > { %s5919_s4 = smov (!%p5845_p5, %s59_s4), %s4804_s25  ;;  %p126_p2 = scmp.ne.s32.totalorder %s4784_s1, %s4780_s21 }
  0x8f   : > { %p61_p13 = scmp.ge.s32.totalorder %s5919_s4, 2  ;;  %p5846_p0 = scmp.eq.s32.totalorder %s4808_s3, 0 }
  0x90   : > { %p127_p1 = scmp.eq.s32.totalorder %s5121_s7, 0  ;;  %p282_p3 = scmp.ne.s32.totalorder %s4772_s30, %s4768_s0 }
  0x91   : > { %p5135_p4 = por %p5846_p0, %p120_p8  ;;  %s5921_s4 = smov (%p61_p13, %s5919_s4), 0 }
  0x92   : > { %5848 = sst [smem:[#allocation36_spill]] %s5921_s4  ;;  %p5145_p7 = por %p127_p1, %p126_p2 }
  0x93   : > { %s110_s28 = ssub.s32 %s4804_s25, %s5921_s4  ;;  %p566_p6 = scmp.eq.s32.totalorder %s5121_s7, 3 }
  0x94   : > { %s5849_s27 = scalar_select %p5145_p7, 1, 0 }
  0x95   : > { %p111_p12 = scmp.eq.s32.totalorder %s110_s28, 0  ;;  %p5154_p9 = por %p282_p3, %p127_p1 }
  0x96   : > { %p5158_p5 = por %p566_p6, %p120_p8  ;;  %p572_p13 = scmp.eq.s32.totalorder %s3879_s14, 3 }
  0x97   : > { %s5850_s5 = scalar_select %p5154_p9, 1, 0 }
  0x98   : > { %s5851_s20 = scalar_select %p5158_p5, 1, 0 }
  0x99   : > { %s5163_s2 = scalar_select %p111_p12, %s4788_s22, %s113_s23  }
  0x9a   : > { %5852 = sst [smem:[#allocation37_spill]] %s5851_s20  ;;  %p5168_p0 = por %p572_p13, %p126_p2 }
  0x9b   : > { %5853 = sst [smem:[#allocation38_spill]] %s5163_s2  ;;  %s602_s6 = sand.u32 1, %s4788_s22  }
  0x9c   : > { %s5854_s0 = scalar_select %p5168_p0, 1, 0 }
  0x9d   : > { %s3882_s26 = sshll.u32 %s602_s6, 3  ;;  %s3883_s10 = sshll.u32 %s4804_s25, 7 }
  0x9e   : > { %5855 = sst [smem:[#allocation39_spill]] %s5854_s0  ;;  %s5856_s4 = sld [smem:[#allocation43_spill]] }
  0x9f   : > { %s606_s20 = scalar_lea.vmem [#allocation2], %s3882_s26  ;;  %p5857_p8 = scmp.lt.s32.totalorder %s4808_s3, 4 }
  0xa0   : > { %s613_s14 = sshll.u32 %s606_s20, 4  ;;  %s5190_s25 = sshll.u32 %s5003_s17, 5  ;;  %s5179_s14 = int_to_ptr.vmem [resolvable:$true] %s613_s14 }
  0xa1   : > { %p5185_p2 = pnand %p5857_p8, %p5135_p4  ;;  %s603_s12 = scalar_lea.sflag [#allocation3], %s602_s6 }
  0xa3   : > { %p4522_p3 = pneg %p5185_p2 }
  0xa4   : > { %s5177_s30 = scalar_lea.hbm %s5856_s4, %s3883_s10  ;;  %s5193_s10 = sshll.u32 %s4800_s24, 9 }
  0xa5   : > { %s4520_s28 = scalar_lea.hbm %s5177_s30, 128  ;;  %s4525_s26 = scalar_lea.hbm %s5856_s4, 256 }
  0xa6   : > { %p4521_p1 = scmp.ne.s32.totalorder %s5177_s30, %s4520_s28  ;;  %p4526_p4 = scmp.lt.u32.totalorder %s5177_s30, %s5856_s4 }
  0xa7   : > { %p4527_p13 = scmp.lt.u32.totalorder %s4525_s26, %s4520_s28  ;;  %p4529_p0 = scmp.lt.u32.totalorder %s4520_s28, %s5177_s30 }
  0xa8   : > { %p4523_p6 = pnand %p4522_p3, %p4521_p1 }
  0xa9   : > { %p4528_p8 = por %p4527_p13, %p4526_p4 }
  0xaa   : > { %p4524_p12 = pneg %p4523_p6 }
  0xab   : > { %p4530_p5 = por %p4529_p0, %p4528_p8 }
  0xad   : > { %p4531_p9 = pnand %p4530_p5, %p4524_p12 }
  0xaf   : > { %4534 = shalt.err (!%p4531_p9)
}
  0xb0   : > { %s4535_s6 = scalar_lea.vmem %s5179_s14, 128  ;;  %s4813_s8 = smov [#allocation2]  }
  0xb1   : > { %p4536_p1 = scmp.ne.s32.totalorder %s5179_s14, %s4535_s6  ;;  %s4540_s20 = sshll.u32 %s4813_s8, 4  ;;  %s4541_s20 = int_to_ptr.vmem [resolvable:$false] %s4540_s20 }
  0xb2   : > { %s4542_s22 = scalar_lea.vmem %s4541_s20, 256  ;;  %p4543_p11 = scmp.lt.s32.totalorder %s5179_s14, %s4541_s20 }
  0xb3   : > { %p4538_p6 = pnand %p4536_p1, %p4522_p3  ;;  %p4544_p4 = scmp.lt.s32.totalorder %s4542_s22, %s4535_s6 }
  0xb5   : > { %p4539_p7 = pneg %p4538_p6  ;;  %p4545_p13 = por %p4544_p4, %p4543_p11 }
  0xb7   : > { %p4546_p0 = pnand %p4545_p13, %p4539_p7 }
  0xb9   : > { %4549 = shalt.err (!%p4546_p0)
}
  0xba   : > { %4269 = dma.hbm_to_vmem [thread:$0]  (!%p5185_p2), %s5177_s30, 128, %s5179_s14, %s603_s12  }
  0xbb   : > { %s5859_s9 = sld [smem:[#allocation50_spill]]  ;;  %s677_s6 = scalar_lea.vmem [#allocation7], %s5190_s25 }
  0xbc   : > { %s684_s8 = sshll.u32 %s677_s6, 4  ;;  %s5227_s8 = int_to_ptr.vmem [resolvable:$true] %s684_s8 }
  0xc1   : > { %s5224_s26 = scalar_lea.hbm %s5859_s9, %s5193_s10  ;;  %s4555_s14 = scalar_lea.hbm %s5859_s9, 1024 }
  0xc2   : > { %s4550_s23 = scalar_lea.hbm %s5224_s26, 512  ;;  %p4556_p5 = scmp.lt.u32.totalorder %s5224_s26, %s5859_s9 }
  0xc3   : > { %p4551_p11 = scmp.ne.s32.totalorder %s5224_s26, %s4550_s23  ;;  %p4557_p2 = scmp.lt.u32.totalorder %s4555_s14, %s4550_s23 }
  0xc4   : > { %p4559_p12 = scmp.lt.u32.totalorder %s4550_s23, %s5224_s26 }
  0xc5   : > { %p4553_p7 = pnand %p4551_p11, %p5033_p10  ;;  %p4558_p3 = por %p4557_p2, %p4556_p5 }
  0xc7   : > { %p4554_p9 = pneg %p4553_p7  ;;  %p4560_p8 = por %p4559_p12, %p4558_p3 }
  0xc9   : > { %p4561_p1 = pnand %p4560_p8, %p4554_p9 }
  0xcb   : > { %4564 = shalt.err (!%p4561_p1)
}
  0xcc   : > { %s4565_s2 = scalar_lea.vmem %s5227_s8, 512  ;;  %s4814_s28 = smov [#allocation7]  }
  0xcd   : > { %p4566_p6 = scmp.ne.s32.totalorder %s5227_s8, %s4565_s2  ;;  %s4570_s6 = sshll.u32 %s4814_s28, 4  ;;  %s4571_s6 = int_to_ptr.vmem [resolvable:$false] %s4570_s6 }
  0xce   : > { %s4572_s20 = scalar_lea.vmem %s4571_s6, 1024  ;;  %p4573_p0 = scmp.lt.s32.totalorder %s5227_s8, %s4571_s6 }
  0xcf   : > { %p4568_p4 = pnand %p4566_p6, %p5033_p10  ;;  %p4574_p11 = scmp.lt.s32.totalorder %s4572_s20, %s4565_s2 }
  0xd1   : > { %p4569_p13 = pneg %p4568_p4  ;;  %p4575_p7 = por %p4574_p11, %p4573_p0 }
  0xd3   : > { %p4576_p5 = pnand %p4575_p7, %p4569_p13 }
  0xd5   : > { %4579 = shalt.err (!%p4576_p5)
}
  0xd6   : > { %s4815_s23 = smov 128   ;;  %s4816_s30 = smov 8  }
  0xd7   : > { %p5860_p9 = scmp.ne.s32.totalorder %s5832_s29, 0  ;;  %s5861_s14 = scalar_lea.sflag [#allocation6], %s5000_s19 }
  0xd8   : > { %s5862_s11 = sld [smem:[#allocation52_spill]]  ;;  %s715_s28 = scalar_lea.vmem [#allocation10], %s5190_s25 }
  0xd9   : > { %4275 = dma.hbm_to_vmem [thread:$0]  (!%p5860_p9), %s5224_s26, 512, %s5227_s8, %s5861_s14, %s4815_s23, %s4815_s23, %s4816_s30  }
  0xda   : > { %s722_s6 = sshll.u32 %s715_s28, 4  ;;  %s5262_s6 = int_to_ptr.vmem [resolvable:$true] %s722_s6 }
  0xde   : > { %s5259_s2 = scalar_lea.hbm %s5862_s11, %s5193_s10  ;;  %s4585_s8 = scalar_lea.hbm %s5862_s11, 1024 }
  0xdf   : > { %s4580_s20 = scalar_lea.hbm %s5259_s2, 512  ;;  %p4586_p8 = scmp.lt.u32.totalorder %s5259_s2, %s5862_s11 }
  0xe0   : > { %p4581_p2 = scmp.ne.s32.totalorder %s5259_s2, %s4580_s20  ;;  %p4587_p1 = scmp.lt.u32.totalorder %s4585_s8, %s4580_s20 }
  0xe1   : > { %p4589_p4 = scmp.lt.u32.totalorder %s4580_s20, %s5259_s2 }
  0xe2   : > { %p4583_p3 = pnand %p4581_p2, %p5033_p10  ;;  %p4588_p6 = por %p4587_p1, %p4586_p8 }
  0xe4   : > { %p4584_p12 = pneg %p4583_p3  ;;  %p4590_p13 = por %p4589_p4, %p4588_p6 }
  0xe6   : > { %p4591_p0 = pnand %p4590_p13, %p4584_p12 }
  0xe8   : > { %4594 = shalt.err (!%p4591_p0)
}
  0xe9   : > { %s4595_s22 = scalar_lea.vmem %s5262_s6, 512  ;;  %s4817_s4 = smov [#allocation10]  }
  0xea   : > { %p4596_p11 = scmp.ne.s32.totalorder %s5262_s6, %s4595_s22  ;;  %s4600_s28 = sshll.u32 %s4817_s4, 4  ;;  %s4601_s28 = int_to_ptr.vmem [resolvable:$false] %s4600_s28 }
  0xeb   : > { %s4602_s26 = scalar_lea.vmem %s4601_s28, 1024  ;;  %p4603_p2 = scmp.lt.s32.totalorder %s5262_s6, %s4601_s28 }
  0xec   : > { %p4598_p7 = pnand %p4596_p11, %p5033_p10  ;;  %p4604_p3 = scmp.lt.s32.totalorder %s4602_s26, %s4595_s22 }
  0xee   : > { %p4599_p5 = pneg %p4598_p7  ;;  %p4605_p8 = por %p4604_p3, %p4603_p2 }
  0xf0   : > { %p4606_p1 = pnand %p4605_p8, %p4599_p5 }
  0xf2   : > { %4609 = shalt.err (!%p4606_p1)
}
  0xf3   : > { %s5863_s20 = scalar_lea.sflag [#allocation9], %s5000_s19  ;;  %s5864_s15 = sld [smem:[#allocation56_spill]] }
  0xf4   : > { %4281 = dma.hbm_to_vmem [thread:$0]  (!%p5860_p9), %s5259_s2, 512, %s5262_s6, %s5863_s20, %s4815_s23, %s4815_s23, %s4816_s30  }
  0xf5   : > { %s767_s22 = scalar_lea.vmem [#allocation13], %s5190_s25 }
  0xf6   : > { %s774_s4 = sshll.u32 %s767_s22, 4  ;;  %s5297_s4 = int_to_ptr.vmem [resolvable:$true] %s774_s4 }
  0xf9   : > { %s5294_s12 = scalar_lea.hbm %s5864_s15, %s5193_s10  ;;  %s4615_s6 = scalar_lea.hbm %s5864_s15, 1024 }
  0xfa   : > { %s4610_s28 = scalar_lea.hbm %s5294_s12, 512  ;;  %p4616_p13 = scmp.lt.u32.totalorder %s5294_s12, %s5864_s15 }
  0xfb   : > { %p4611_p12 = scmp.ne.s32.totalorder %s5294_s12, %s4610_s28  ;;  %p4617_p0 = scmp.lt.u32.totalorder %s4615_s6, %s4610_s28 }
  0xfc   : > { %p4619_p7 = scmp.lt.u32.totalorder %s4610_s28, %s5294_s12 }
  0xfd   : > { %p4613_p6 = pnand %p4611_p12, %p5033_p10  ;;  %p4618_p11 = por %p4617_p0, %p4616_p13 }
  0xff   : > { %p4614_p4 = pneg %p4613_p6  ;;  %p4620_p5 = por %p4619_p7, %p4618_p11 }
 0x101   : > { %p4621_p2 = pnand %p4620_p5, %p4614_p4 }
 0x103   : > { %4624 = shalt.err (!%p4621_p2)
}
 0x104   : > { %s4625_s25 = scalar_lea.vmem %s5297_s4, 512  ;;  %s4818_s8 = smov [#allocation13]  }
 0x105   : > { %p4626_p3 = scmp.ne.s32.totalorder %s5297_s4, %s4625_s25  ;;  %s4630_s14 = sshll.u32 %s4818_s8, 4  ;;  %s4631_s14 = int_to_ptr.vmem [resolvable:$false] %s4630_s14 }
 0x106   : > { %s4632_s22 = scalar_lea.vmem %s4631_s14, 1024  ;;  %p4633_p12 = scmp.lt.s32.totalorder %s5297_s4, %s4631_s14 }
 0x107   : > { %p4628_p8 = pnand %p4626_p3, %p5033_p10  ;;  %p4634_p6 = scmp.lt.s32.totalorder %s4632_s22, %s4625_s25 }
 0x109   : > { %p4629_p1 = pneg %p4628_p8  ;;  %p4635_p13 = por %p4634_p6, %p4633_p12 }
 0x10b   : > { %p4636_p0 = pnand %p4635_p13, %p4629_p1 }
 0x10d   : > { %4639 = shalt.err (!%p4636_p0)
}
 0x10e   : > { %s5865_s28 = scalar_lea.sflag [#allocation12], %s5000_s19  ;;  %s5866_s16 = sld [smem:[#allocation57_spill]] }
 0x10f   : > { %4287 = dma.hbm_to_vmem [thread:$0]  (!%p5860_p9), %s5294_s12, 512, %s5297_s4, %s5865_s28, %s4815_s23, %s4815_s23, %s4816_s30  }
 0x110   : > { %s787_s20 = scalar_lea.vmem [#allocation14], %s5003_s17  ;;  %s785_s19 = scalar_lea.sflag [#allocation15], %s5003_s17 }
 0x111   : > { %s794_s10 = sshll.u32 %s787_s20, 4  ;;  %s795_s10 = int_to_ptr.vmem [resolvable:$true] %s794_s10 }
 0x114   : > { %s5329_s6 = scalar_lea.hbm %s5866_s16, %s5006_s18  ;;  %s4645_s30 = scalar_lea.hbm %s5866_s16, 32 }
 0x115   : > { %s4640_s25 = scalar_lea.hbm %s5329_s6, 16  ;;  %p4646_p5 = scmp.lt.u32.totalorder %s5329_s6, %s5866_s16 }
 0x116   : > { %p4641_p4 = scmp.ne.s32.totalorder %s5329_s6, %s4640_s25  ;;  %p4647_p2 = scmp.lt.u32.totalorder %s4645_s30, %s4640_s25 }
 0x117   : > { %p4649_p8 = scmp.lt.u32.totalorder %s4640_s25, %s5329_s6 }
 0x118   : > { %p4643_p11 = pnand %p4641_p4, %p5033_p10  ;;  %p4648_p3 = por %p4647_p2, %p4646_p5 }
 0x11a   : > { %p4644_p7 = pneg %p4643_p11  ;;  %p4650_p1 = por %p4649_p8, %p4648_p3 }
 0x11c   : > { %p4651_p12 = pnand %p4650_p1, %p4644_p7 }
 0x11e   : > { %4654 = shalt.err (!%p4651_p12)
}
 0x11f   : > { %s4655_s17 = scalar_lea.vmem %s795_s10, 16  ;;  %s4819_s4 = smov [#allocation14]  }
 0x120   : > { %p4656_p6 = scmp.ne.s32.totalorder %s795_s10, %s4655_s17  ;;  %s4660_s14 = sshll.u32 %s4819_s4, 4  ;;  %s4661_s14 = int_to_ptr.vmem [resolvable:$false] %s4660_s14 }
 0x121   : > { %s4662_s22 = scalar_lea.vmem %s4661_s14, 32  ;;  %p4663_p4 = scmp.lt.s32.totalorder %s795_s10, %s4661_s14 }
 0x122   : > { %p4658_p13 = pnand %p4656_p6, %p5033_p10  ;;  %p4664_p11 = scmp.lt.s32.totalorder %s4662_s22, %s4655_s17 }
 0x124   : > { %p4659_p0 = pneg %p4658_p13  ;;  %p4665_p9 = por %p4664_p11, %p4663_p4 }
 0x126   : > { %p4666_p2 = pnand %p4665_p9, %p4659_p0 }
 0x128   : > { %4669 = shalt.err (!%p4666_p2)
}
 0x129   : > { %p5867_p5 = scmp.ne.s32.totalorder %s5832_s29, 0  ;;  %s5868_s28 = sld [smem:[#allocation35_spill]] }
 0x12b   : > { %4290 = dma.hbm_to_vmem [thread:$0]  (!%p5867_p5), %s5329_s6, 16, %s795_s10, %s785_s19  }
 0x12f   : > { %p5869_p7 = scmp.ne.s32.totalorder %s5868_s28, 0 }
 0x131   : > { %817 = sbr.rel (%p5869_p7) target bundleno = 3619 (0xe23), region = 96 }
 0x138   : > { %s5353_s13 = sand.u32 1, %s4784_s1   ;;  %p5870_p10 = scmp.ne.s32.totalorder %s5849_s27, 0 }
 0x139   : > { %s5790_s26 = sshll.u32 %s5353_s13, 3  ;;  %s820_s2 = scalar_lea.sflag [#allocation3], %s5353_s13 }
 0x13a   : > { %s5359_s20 = scalar_lea.vmem [#allocation2], %s5790_s26 }
 0x13b   : > { %4743 = dma.done.wait (%p5870_p10), %s820_s2, 128  }
 0x13c   : > { %4745 = vsyncadd (%p5870_p10), %s820_s2, 4294967168  ;;  %s5871_s29 = sld [smem:[#allocation23_spill]]  ;;  %s828_s6 = sand.u32 1, %s5121_s7  }
 0x13d   : > { %s829_s19 = scalar_lea.sflag [#allocation6], %s828_s6  ;;  %p5872_p9 = scmp.ne.s32.totalorder %s5850_s5, 0 }
 0x142   : > { %s5367_s10 = sand.u32 1, %s5871_s29  }
 0x143   : > { %4747 = dma.done.wait (%p5872_p9), %s829_s19, 528  }
 0x144   : > { %4749 = vsyncadd (%p5872_p9), %s829_s19, 4294966768  ;;  %s3899_s8 = sshll.u32 %s5367_s10, 5  ;;  %s846_s23 = scalar_lea.sflag [#allocation9], %s828_s6 }
 0x145   : > { %s5375_s27 = scalar_lea.vmem [#allocation7], %s3899_s8 }
 0x146   : > { %4751 = dma.done.wait (%p5872_p9), %s846_s23, 528  }
 0x147   : > { %4753 = vsyncadd (%p5872_p9), %s846_s23, 4294966768  ;;  %s5382_s7 = scalar_lea.vmem [#allocation10], %s3899_s8  ;;  %s863_s12 = scalar_lea.sflag [#allocation12], %s828_s6 }
 0x148   : > { %4755 = dma.done.wait (%p5872_p9), %s863_s12, 528  }
 0x149   : > { %4757 = vsyncadd (%p5872_p9), %s863_s12, 4294966768  ;;  %s5389_s17 = scalar_lea.vmem [#allocation13], %s3899_s8  ;;  %s880_s4 = scalar_lea.sflag [#allocation15], %s5367_s10 }
 0x14a   : > { %5873 = sst [smem:[#allocation40_spill]] %s5389_s17 }
 0x14b   : > { %4759 = dma.done.wait (%p5872_p9), %s880_s4, 16  }
 0x14c   : > { %4761 = vsyncadd (%p5872_p9), %s880_s4, 4294967280  ;;  %s5874_s22 = sld [smem:[#allocation29_spill]]  ;;  %s5875_s28 = sld [smem:[#allocation28_spill]] }
 0x14d   : > { %s5876_s19 = sld [smem:[#allocation42_spill]]  ;;  %s5877_s14 = sld [smem:[#allocation44_spill]] }
 0x14e   : > { %s5879_s16 = sld [smem:[#allocation46_spill]]  ;;  %s5881_s5 = sld [smem:[#allocation48_spill]] }
 0x14f   : > { %s5882_s3 = sld [smem:[#allocation54_spill]]  ;;  %s5883_s11 = sld [smem:[#allocation55_spill]] }
 0x150   : > { %s5884_s0 = sld [smem:[#allocation59_spill]] }
 0x152   : > { %p1009_p3 = scmp.lt.s32.totalorder %s5874_s22, 1  ;;  %p1013_p8 = scmp.lt.s32.totalorder %s5875_s28, 1 }
 0x153   : > { %p3914_p1 = scmp.ne.s32.totalorder %s5875_s28, 0 }
 0x154   : > { %s5923_s22 = smov (!%p1009_p3, %s5874_s22), 1  ;;  %vm1055_vm0 = vcmask (!%p3914_p1), 261120  }
 0x155   : > { %s5401_s2 = scalar_select %p1013_p8, %s5875_s28, 1 }
 0x156   : > { %s3903_s29 = sshll.u32 %s5923_s22, 3 }
 0x157   : > { %s1012_s8 = scalar_lea.vmem %s5876_s19, %s3903_s29  ;;  %s3960_s23 = sshll.u32 %s5401_s2, 5 }
 0x158   : > { %s1017_s18 = scalar_lea.vmem %s5877_s14, %s3960_s23  ;;  %s5417_s24 = scalar_lea.vmem %s5879_s16, %s3960_s23  ;;  %v1054_v0 = vld [vmem:[%s1012_s8] sm:$0xff] (!%p3914_p1) }
 0x159   : > { %s5426_s19 = scalar_lea.vmem %s5881_s5, %s3960_s23  ;;  %s3910_s12 = sshll.u32 %s5401_s2, 2 }
 0x15a   : > { %s5432_s25 = scalar_lea.vmem %s5882_s3, %s3910_s12  ;;  %s5437_s15 = scalar_lea.vmem %s5883_s11, %s3910_s12 }
 0x15b   : > { %s3963_s16 = sshll.u32 %s5401_s2, 6  ;;  %s1049_s22 = scalar_lea.vmem %s5884_s0, %s5401_s2 }
 0x15c   : > { %s5885_s23 = sld [smem:[#allocation58_spill]]  ;;  %s5886_s5 = sshll.u32 %s5353_s13, 3 }
 0x15d   : > { %s5451_s17 = scalar_lea.vmem [#allocation16], %s5886_s5  ;;  %1053 = sbr.rel (%p3914_p1) target bundleno = 356 (0x164), region = 132 }
 0x15e   : > { %1056 = vst.msk [vmem:[%s5451_s17] sm:$0xff] (!%p3914_p1), %vm1055_vm0, %v1054_v0 }
 0x162   : > { %s5447_s29 = scalar_lea.vmem %s5885_s23, %s3963_s16 }
 0x164 PF: > { %v1060_v1 = vld [vmem:[%s1017_s18] sm:$0xff]  ;;  %v1061_v2 = vld [vmem:[%s1017_s18 + $0x8] sm:$0xff]  ;;  %v1062_v3 = vld [vmem:[%s1017_s18 + $0x10] sm:$0xff]  ;;  %v4820_v4 = vmov 0.0|0.0   ;;  %vm4821_vm1 = vmmov 0   ;;  %v4822_v7 = vmov 0.0  }
 0x165   : > { %4200 = vmatprep.subr.bf16.mxu0 %v4820_v4  ;;  %v4201_v5 = vpack.c.bf16 %v1061_v2, %v1060_v1  ;;  %v1063_v6 = vld [vmem:[%s1017_s18 + $0x18] sm:$0xff]  ;;  %4043 = vmatprep.mubr.msk.f32.mxu0 %vm4821_vm1, %v4822_v7  ;;  %vm1071_vm2 = vcmask 261120   ;;  %s5887_s3 = sld [smem:[#allocation45_spill]]  ;;  %s4823_s28 = smov 96   ;;  %v1145_v20 = vld [vmem:[%s5426_s19] sm:$0xff]  ;;  %v1146_v21 = vld [vmem:[%s5426_s19 + $0x8] sm:$0xff] }
 0x166   : > { %4206 = vmatprep.subr.bf16.mxu1 %v4820_v4  ;;  %4054 = vmatprep.mubr.msk.f32.mxu1 %vm4821_vm1, %v4822_v7  ;;  %v4204_v8 = vpack.c.bf16 %v1063_v6, %v1062_v3  ;;  %v5463_v9 = vld [vmem:[%s5451_s17] sm:$0xff]  ;;  %v4207_v23 = vpack.c.bf16 %v1146_v21, %v1145_v20  ;;  %v1229_v24 = vld [vmem:[%s5375_s27 + $0x18] sm:$0xff]  ;;  %vm1541_vm3 = vcmask 64512   ;;  %s5889_s8 = sld [smem:[#allocation41_spill]]  ;;  %s5890_s12 = scalar_lea.vmem [#allocation5], %s5367_s10  ;;  %vm3433_vm4 = vcmask 523264  }
 0x167   : > { %4202 = vmatpush3.bf16.msra.mxu0 %v4201_v5  ;;  %v1226_v16 = vld [vmem:[%s5375_s27] sm:$0xff]  ;;  %v1227_v17 = vld [vmem:[%s5375_s27 + $0x8] sm:$0xff]  ;;  %v1228_v22 = vld [vmem:[%s5375_s27 + $0x10] sm:$0xff]  ;;  %s5891_s14 = scalar_lea.vmem [#allocation8], %s5367_s10  ;;  %s5892_s4 = sld [smem:[#allocation47_spill]] }
 0x168   : > { %4203 = vmatprep.subr.bf16.mxu0 %v4820_v4  ;;  %v4213_v18 = vpack.c.bf16 %v1227_v17, %v1226_v16  ;;  %v4216_v25 = vpack.c.bf16 %v1229_v24, %v1228_v22  ;;  %4208 = vmatpush3.bf16.msra.mxu1 %v4207_v23  ;;  %v1058_v27 = vld [vmem:[%s5359_s20] sm:$0xff]  ;;  %v1147_v28 = vld [vmem:[%s5426_s19 + $0x10] sm:$0xff]  ;;  %v1148_v29 = vld [vmem:[%s5426_s19 + $0x18] sm:$0xff]  ;;  %s4824_s19 = smov 64   ;;  %s5894_s30 = scalar_lea.vmem [#allocation11], %s5367_s10 }
 0x169   : > { %4209 = vmatprep.subr.bf16.mxu1 %v4820_v4  ;;  %v4210_v30 = vpack.c.bf16 %v1148_v29, %v1147_v28  ;;  %v3917_v61 = vld [vmem:[%s5890_s12] ss:$0 sm:$0xff]  ;;  %s5895_s11 = sld [smem:[#allocation40_spill]]  ;;  %s3533_s9 = scalar_lea.sflag [#allocation4], %s5353_s13 }
 0x16b   : > { %4205 = vmatpush3.bf16.msra.mxu0 %v4204_v8  ;;  %s5888_s18 = scalar_lea.vmem %s5887_s3, %s5401_s2  ;;  %s4825_s3 = smov [#allocation16]  }
 0x16c   : > { %4212 = vmatprep.subr.bf16.mxu0 %v4820_v4  ;;  %v3915_v10 = vld [vmem:[%s5888_s18] ss:$0 sm:$0xff]  ;;  %4211 = vmatpush3.bf16.msra.mxu1 %v4210_v30  ;;  %s4674_s18 = sshll.u32 %s4825_s3, 4  ;;  %s4675_s18 = int_to_ptr.vmem [resolvable:$false] %s4674_s18 }
 0x16d   : > { %4073 = vmatprep.subr.mxu1 %v4822_v7  ;;  %v1059_v44 = vld [vmem:[%s5889_s8] sm:$0xff]  ;;  %s5893_s26 = scalar_lea.vmem %s5892_s4, %s5401_s2  ;;  %s5899_s2 = sld [smem:[#allocation37_spill]] }
 0x16e   : > { %4044 = vmatmul.mubr.msk.f32.vlgmr.msra.gmra.mrb[0].mxu0 %vm1071_vm2, %v5463_v9 }
 0x16f   : > { %4065 = vmatprep.mubr.msk.f32.mxu0 %vm4821_vm1, %v4822_v7  ;;  %4214 = vmatpush3.bf16.msra.mxu0 %v4213_v18 }
 0x170   : > { %4215 = vmatprep.subr.bf16.mxu0 %v4820_v4  ;;  %4055 = vmatmul.mubr.msk.f32.vlgmr.msra.gmra.mrb[0].mxu1 %vm1071_vm2, %v5463_v9 }
 0x171   : > { %4075 = vmatprep.mubr.msk.f32.mxu1 %vm4821_vm1, %v4822_v7 }
 0x173   : > { %4217 = vmatpush3.bf16.msra.mxu0 %v4216_v25  ;;  %v3919_v25 = vld [vmem:[%s5891_s14] ss:$0 sm:$0xff]  ;;  %p5901_p6 = scmp.ne.s32.totalorder %s5899_s2, 0 }
 0x174   : > { %4068 = vmatprep.subr.mxu0 %v4822_v7 }
 0x176   : > { %4066 = vmatmul.mubr.msk.f32.vlgmr.msra.gmra.mrb[2].mxu0 %vm1071_vm2, %v1058_v27 }
 0x177   : > { %4070 = vmatprep.mubr.msk.f32.mxu0 %vm4821_vm1, %v4822_v7 }
 0x241   : > { %v1141_v11 = vpop.f32.mrb[0].mxu0 }
 0x242   : > { %v5475_v12 = vadd.f32 %v3915_v10, %v1141_v11  ;;  %v4045_v13 = vpop.f32.mrb[1].mxu0 }
 0x243   : > { %v1222_v42 = vpop.f32.mrb[0].mxu1 }
 0x244   : > { %1471 = vrot.lane.b32.xlu0 %v5475_v12, %s4823_s28  ;;  %v4056_v43 = vpop.f32.mrb[1].mxu1  ;;  %v1223_v62 = vadd.f32 %v3917_v61, %v1222_v42 }
 0x249   : > { %v5516_v40 = vpop.f32.mrb[2].mxu0 }
 0x24a   : > { %v4067_v41 = vpop.f32.mrb[3].mxu0 }
 0x262   : > { %1310 = vxpose.xlu0.b32.start.end [1/1] (short) (narrow) %v5475_v12, 32 }
 0x2b6   : > { %v1472_v14 = vpop.permute.xlu0 %1471 }
 0x2e2   : > { %v1326_v15 = vpop.trf.xlu0 }
 0x2e3   : > { %1342 = vxpose.xlu1.b32.start.end [1/1] (short) (narrow) %v1326_v15, 8 }
 0x2e6   : > { %v1327_v19 = vpop.trf.xlu0 }
 0x2e7   : > { %1374 = vxpose.xlu1.b32.start.end [1/1] (short) (narrow) %v1327_v19, 8 }
 0x2ea   : > { %v1328_v26 = vpop.trf.xlu0 }
 0x2eb   : > { %1406 = vxpose.xlu1.b32.start.end [1/1] (short) (narrow) %v1328_v26, 8  ;;  %v5535_v26 = vadd.f32 %v3919_v25, %v5516_v40 }
 0x2ee   : > { %v1329_v31 = vpop.trf.xlu0 }
 0x2ef   : > { %1474 = vxpose.xlu1.b32.start.end [1/1] (short) (narrow) %v1472_v14, 32 }
 0x2fc   : > { %1438 = vxpose.xlu1.b32.start.end [1/1] (short) (narrow) %v1329_v31, 8 }
 0x363   : > { %v1358_v32 = vpop.trf.xlu1 }
 0x367   : > { %v1390_v33 = vpop.trf.xlu1 }
 0x36b   : > { %v1422_v34 = vpop.trf.xlu1 }
 0x36f   : > { %v1490_v35 = vpop.trf.xlu1 }
 0x370   : > { %4069 = vmatpush3.msra.mxu0 %v1490_v35 }
 0x371   : > { %4071 = vmatmul.mubr.msk.f32.vlgmr.msra.gmra.mrb[4].mxu0 %vm1541_vm3, %v1358_v32  ;;  %4078 = vmatprep.subr.mxu0 %v4822_v7 }
 0x372   : > { %4080 = vmatprep.mubr.msk.f32.mxu0 %vm4821_vm1, %v4822_v7 }
 0x373   : > { %v1491_v36 = vpop.trf.xlu1 }
 0x374   : > { %4074 = vmatpush3.msra.mxu1 %v1491_v36 }
 0x375   : > { %4076 = vmatmul.mubr.msk.f32.vlgmr.msra.gmra.mrb[2].mxu1 %vm1541_vm3, %v1390_v33  ;;  %4083 = vmatprep.subr.mxu1 %v4822_v7 }
 0x376   : > { %4085 = vmatprep.mubr.msk.f32.mxu1 %vm4821_vm1, %v4822_v7 }
 0x377   : > { %v1492_v37 = vpop.trf.xlu1 }
 0x378   : > { %4079 = vmatpush3.msra.mxu0 %v1492_v37 }
 0x379   : > { %4081 = vmatmul.mubr.msk.f32.vlgmr.msra.gmra.mrb[6].mxu0 %vm1541_vm3, %v1422_v34  ;;  %4088 = vmatprep.subr.mxu0 %v4822_v7 }
 0x37a   : > { %4090 = vmatprep.mubr.msk.f32.mxu0 %vm4821_vm1, %v4822_v7 }
 0x37b   : > { %v1493_v38 = vpop.trf.xlu1 }
 0x37c   : > { %4084 = vmatpush3.msra.mxu1 %v1493_v38 }
 0x37d   : > { %4093 = vmatprep.subr.mxu1 %v4822_v7 }
 0x37f   : > { %v1454_v39 = vpop.trf.xlu1 }
 0x380   : > { %4086 = vmatmul.mubr.msk.f32.vlgmr.msra.gmra.mrb[4].mxu1 %vm1541_vm3, %v1454_v39 }
 0x381   : > { %4095 = vmatprep.mubr.msk.f32.mxu1 %vm4821_vm1, %v4822_v7 }
 0x444   : > { %v1611_v45 = vpop.f32.mrb[4].mxu0 }
 0x445   : > { %v1612_v46 = vadd.f32 %v1611_v45, %v1059_v44  ;;  %v4072_v47 = vpop.f32.mrb[5].mxu0 }
 0x447   : > { %v1834_v48 = vsel %vm1541_vm3, %v1612_v46, -inf }
 0x448   : > { %v1684_v49 = vpop.f32.mrb[2].mxu1  ;;  %1835 = vmax.xlane.f32.xlu1 %v1834_v48 }
 0x449   : > { %v1685_v50 = vadd.f32 %v1684_v49, %v1059_v44  ;;  %v4077_v51 = vpop.f32.mrb[3].mxu1 }
 0x44b   : > { %v1837_v52 = vsel %vm1541_vm3, %v1685_v50, -inf }
 0x44c   : > { %1838 = vmax.xlane.f32.xlu0 %v1837_v52  ;;  %v1757_v53 = vpop.f32.mrb[6].mxu0 }
 0x44d   : > { %v1758_v54 = vadd.f32 %v1757_v53, %v1059_v44  ;;  %v4082_v55 = vpop.f32.mrb[7].mxu0 }
 0x44f   : > { %v1840_v56 = vsel %vm1541_vm3, %v1758_v54, -inf }
 0x450   : > { %1841 = vmax.xlane.f32.xlu1 %v1840_v56 }
 0x453   : > { %v1830_v57 = vpop.f32.mrb[4].mxu1 }
 0x454   : > { %v1831_v58 = vadd.f32 %v1830_v57, %v1059_v44  ;;  %v4087_v59 = vpop.f32.mrb[5].mxu1 }
 0x456   : > { %v1843_v60 = vsel %vm1541_vm3, %v1831_v58, -inf }
 0x457   : > { %1844 = vmax.xlane.f32.xlu1 %v1843_v60 }
 0x468   : > { %1506 = vrot.lane.b32.xlu1 %v5475_v12, %s4824_s19 }
 0x479   : > { %2214 = vxpose.xlu0.b32.start.end [1/1] (short) (narrow) %v1223_v62, 32 }
 0x4d5   : > { %v1836_v63 = vpop.xlane.xlu1 %1835 }
 0x4d6   : > { %v1846_v0 = vsub.f32 %v1612_v46, %v1836_v63 }
 0x4d8   : > { %v1850_v1 = vmul.f32 1.442695, %v1846_v0 }
 0x4d9   : > { %v1839_v2 = vpop.xlane.xlu0 %1838 }
 0x4da   : > { %4392 = vpow2.f32 %v1850_v1  ;;  %v1847_v3 = vsub.f32 %v1685_v50, %v1839_v2 }
 0x4dc   : > { %v1852_v5 = vmul.f32 1.442695, %v1847_v3 }
 0x4dd   : > { %v1842_v6 = vpop.xlane.xlu1 %1841 }
 0x4de   : > { %4394 = vpow2.f32 %v1852_v5  ;;  %v1848_v8 = vsub.f32 %v1758_v54, %v1842_v6 }
 0x4e0   : > { %v1854_v10 = vmul.f32 1.442695, %v1848_v8 }
 0x4e2   : > { %4396 = vpow2.f32 %v1854_v10 }
 0x4e4   : > { %v4393_v11 = vpop.eup %4392  ;;  %v1845_v13 = vpop.xlane.xlu1 %1844 }
 0x4e5   : > { %v1849_v14 = vsub.f32 %v1831_v58, %v1845_v13  ;;  %v1858_v12 = vsel %vm1541_vm3, %v4393_v11, 0.0 }
 0x4e6   : > { %1859 = vadd.xlane.f32.xlu0 %v1858_v12 }
 0x4e7   : > { %v1856_v15 = vmul.f32 1.442695, %v1849_v14 }
 0x4e8   : > { %v4395_v16 = vpop.eup %4394  ;;  %v1507_v24 = vpop.permute.xlu1 %1506 }
 0x4e9   : > { %4398 = vpow2.f32 %v1856_v15  ;;  %v1861_v17 = vsel %vm1541_vm3, %v4395_v16, 0.0 }
 0x4ea   : > { %1862 = vadd.xlane.f32.xlu1 %v1861_v17 }
 0x4ec   : > { %v4397_v18 = vpop.eup %4396 }
 0x4ed   : > { %v1864_v19 = vsel %vm1541_vm3, %v4397_v18, 0.0 }
 0x4ee   : > { %1865 = vadd.xlane.f32.xlu0 %v1864_v19 }
 0x4f3   : > { %v4399_v20 = vpop.eup %4398 }
 0x4f4   : > { %v1867_v21 = vsel %vm1541_vm3, %v4399_v20, 0.0 }
 0x4f5   : > { %1868 = vadd.xlane.f32.xlu0 %v1867_v21 }
 0x4f9   : > { %v2230_v22 = vpop.trf.xlu0 }
 0x4fd   : > { %v2231_v23 = vpop.trf.xlu0 }
 0x501   : > { %v2232_v27 = vpop.trf.xlu0 }
 0x505   : > { %v2233_v28 = vpop.trf.xlu0 }
 0x51d   : > { %1509 = vxpose.xlu1.b32.start.end [1/1] (short) (narrow) %v1507_v24, 32 }
 0x522   : > { %2374 = vxpose.xlu0.b32.start.end [1/1] (short) (narrow) %v5535_v26, 32 }
 0x52a   : > { %2342 = vxpose.xlu1.b32.start.end [1/1] (short) (narrow) %v2233_v28, 8 }
 0x52f   : > { %2246 = vxpose.xlu0.b32.start.end [1/1] (short) (narrow) %v2230_v22, 8 }
 0x533   : > { %2278 = vxpose.xlu0.b32.start.end [1/1] (short) (narrow) %v2231_v23, 8 }
 0x537   : > { %2310 = vxpose.xlu0.b32.start.end [1/1] (short) (narrow) %v2232_v27, 8 }
 0x573   : > { %v1860_v29 = vpop.xlane.xlu0 %1859 }
 0x574   : > { %4400 = vrcp.f32 %v1860_v29 }
 0x577   : > { %v1863_v30 = vpop.xlane.xlu1 %1862 }
 0x578   : > { %4402 = vrcp.f32 %v1863_v30 }
 0x57b   : > { %v1866_v35 = vpop.xlane.xlu0 %1865 }
 0x57c   : > { %4404 = vrcp.f32 %v1866_v35 }
 0x57e   : > { %v4401_v31 = vpop.eup %4400 }
 0x57f   : > { %v1871_v32 = vmul.f32 %v4401_v31, %v4393_v11 }
 0x581   : > { %4089 = vmatpush3.xpose.msk.msra.mxu0 %vm1541_vm3, %v1871_v32 }
 0x582   : > { %v4403_v33 = vpop.eup %4402  ;;  %4098 = vmatprep.subr.mxu0 %v4822_v7  ;;  %v1869_v36 = vpop.xlane.xlu0 %1868 }
 0x583   : > { %v1873_v34 = vmul.f32 %v4403_v33, %v4395_v16  ;;  %4406 = vrcp.f32 %v1869_v36 }
 0x585   : > { %4094 = vmatpush3.xpose.msk.msra.mxu1 %vm1541_vm3, %v1873_v34 }
 0x586   : > { %4103 = vmatprep.subr.mxu1 %v4822_v7  ;;  %v4405_v37 = vpop.eup %4404 }
 0x587   : > { %v1875_v38 = vmul.f32 %v4405_v37, %v4397_v18 }
 0x58d   : > { %v4407_v40 = vpop.eup %4406 }
 0x58e   : > { %v1877_v41 = vmul.f32 %v4407_v40, %v4399_v20 }
 0x59d   : > { %v1525_v39 = vpop.trf.xlu1 }
 0x59e   : > { %4091 = vmatmul.mubr.msk.f32.vlgmr.msra.gmra.mrb[8].mxu0 %vm1541_vm3, %v1525_v39 }
 0x59f   : > { %4099 = vmatpush3.xpose.msk.msra.mxu0 %vm1541_vm3, %v1875_v38  ;;  %4100 = vmatprep.mubr.msk.f32.mxu0 %vm4821_vm1, %v4822_v7 }
 0x5a0   : > { %4108 = vmatprep.subr.mxu0 %v4822_v7 }
 0x5a1   : > { %v1526_v42 = vpop.trf.xlu1 }
 0x5a2   : > { %v2390_v43 = vpop.trf.xlu0  ;;  %4096 = vmatmul.mubr.msk.f32.vlgmr.msra.gmra.mrb[6].mxu1 %vm1541_vm3, %v1526_v42 }
 0x5a3   : > { %4104 = vmatpush3.xpose.msk.msra.mxu1 %vm1541_vm3, %v1877_v41  ;;  %4105 = vmatprep.mubr.msk.f32.mxu1 %vm4821_vm1, %v4822_v7 }
 0x5a4   : > { %4113 = vmatprep.subr.mxu1 %v4822_v7 }
 0x5a5   : > { %v1527_v44 = vpop.trf.xlu1 }
 0x5a6   : > { %v2391_v45 = vpop.trf.xlu0  ;;  %4101 = vmatmul.mubr.msk.f32.vlgmr.msra.gmra.mrb[10].mxu0 %vm1541_vm3, %v1527_v44  ;;  %v3116_v44 = vld [vmem:[%s5417_s24] sm:$0xff] }
 0x5a7   : > { %4109 = vmatpush3.msra.mxu0 %v2390_v43  ;;  %4110 = vmatprep.mubr.msk.f32.mxu0 %vm4821_vm1, %v4822_v7 }
 0x5a8   : > { %4118 = vmatprep.subr.mxu0 %v4822_v7 }
 0x5a9   : > { %v1528_v46 = vpop.trf.xlu1 }
 0x5aa   : > { %v2392_v47 = vpop.trf.xlu0  ;;  %4106 = vmatmul.mubr.msk.f32.vlgmr.msra.gmra.mrb[8].mxu1 %vm1541_vm3, %v1528_v46 }
 0x5ab   : > { %4114 = vmatpush3.msra.mxu1 %v2391_v45  ;;  %4115 = vmatprep.mubr.msk.f32.mxu1 %vm4821_vm1, %v4822_v7  ;;  %v3117_v45 = vld [vmem:[%s5417_s24 + $0x8] sm:$0xff] }
 0x5ac   : > { %4123 = vmatprep.subr.mxu1 %v4822_v7 }
 0x5ad   : > { %v2358_v51 = vpop.trf.xlu1 }
 0x5ae   : > { %v2393_v48 = vpop.trf.xlu0 }
 0x5b2   : > { %v2262_v49 = vpop.trf.xlu0 }
 0x5b3   : > { %4111 = vmatmul.mubr.msk.f32.vlgmr.msra.gmra.mrb[12].mxu0 %vm1541_vm3, %v2262_v49 }
 0x5b4   : > { %4119 = vmatpush3.msra.mxu0 %v2392_v47  ;;  %4120 = vmatprep.mubr.msk.f32.mxu0 %vm4821_vm1, %v4822_v7 }
 0x5b5   : > { %4128 = vmatprep.subr.mxu0 %v4822_v7 }
 0x5b6   : > { %v2294_v50 = vpop.trf.xlu0 }
 0x5b7   : > { %4116 = vmatmul.mubr.msk.f32.vlgmr.msra.gmra.mrb[10].mxu1 %vm1541_vm3, %v2294_v50  ;;  %v3118_v50 = vld [vmem:[%s5417_s24 + $0x10] sm:$0xff] }
 0x5b8   : > { %4124 = vmatpush3.msra.mxu1 %v2393_v48  ;;  %4125 = vmatprep.mubr.msk.f32.mxu1 %vm4821_vm1, %v4822_v7  ;;  %v4219_v48 = vpack.c.bf16 %v3117_v45, %v3116_v44  ;;  %v3333_v44 = vld [vmem:[%s5895_s11] sm:$0xff]  ;;  %v3334_v45 = vld [vmem:[%s5895_s11 + $0x8] sm:$0xff] }
 0x5b9   : > { %4133 = vmatprep.subr.mxu1 %v4822_v7 }
 0x5ba   : > { %v2326_v52 = vpop.trf.xlu0 }
 0x5bb   : > { %4121 = vmatmul.mubr.msk.f32.vlgmr.msra.gmra.mrb[14].mxu0 %vm1541_vm3, %v2326_v52  ;;  %4126 = vmatmul.mubr.msk.f32.vlgmr.msra.gmra.mrb[12].mxu1 %vm1541_vm3, %v2358_v51  ;;  %v3119_v51 = vld [vmem:[%s5417_s24 + $0x18] sm:$0xff] }
 0x5bc   : > { %4130 = vmatprep.mubr.msk.f32.mxu0 %vm4821_vm1, %v4822_v7  ;;  %4135 = vmatprep.mubr.msk.f32.mxu1 %vm4821_vm1, %v4822_v7 }
 0x671   : > { %v1950_v53 = vpop.f32.mrb[8].mxu0 }
 0x672   : > { %v4092_v54 = vpop.f32.mrb[9].mxu0 }
 0x673   : > { %v4222_v54 = vpack.c.bf16 %v3119_v51, %v3118_v50  ;;  %v3418_v50 = vld [vmem:[%s5447_s29] sm:$0xff]  ;;  %v3419_v51 = vld [vmem:[%s5447_s29 + $0x8] sm:$0xff] }
 0x675   : > { %v2026_v55 = vpop.f32.mrb[6].mxu1 }
 0x676   : > { %v4097_v56 = vpop.f32.mrb[7].mxu1 }
 0x677   : > { %v3225_v56 = vld [vmem:[%s5382_s7] sm:$0xff] }
 0x679   : > { %v2102_v57 = vpop.f32.mrb[10].mxu0 }
 0x67a   : > { %v4102_v58 = vpop.f32.mrb[11].mxu0 }
 0x67b   : > { %v3227_v58 = vld [vmem:[%s5382_s7 + $0x10] sm:$0xff] }
 0x67d   : > { %v2178_v59 = vpop.f32.mrb[8].mxu1 }
 0x67e   : > { %v4107_v60 = vpop.f32.mrb[9].mxu1 }
 0x67f   : > { %v3228_v60 = vld [vmem:[%s5382_s7 + $0x18] sm:$0xff] }
 0x686   : > { %v2511_v61 = vpop.f32.mrb[12].mxu0 }
 0x687   : > { %v4112_v62 = vpop.f32.mrb[13].mxu0  ;;  %v2734_v63 = vsel %vm1541_vm3, %v2511_v61, -inf }
 0x688   : > { %2735 = vmax.xlane.f32.xlu0 %v2734_v63 }
 0x68a   : > { %v2584_v0 = vpop.f32.mrb[10].mxu1 }
 0x68b   : > { %v4117_v1 = vpop.f32.mrb[11].mxu1  ;;  %v2737_v2 = vsel %vm1541_vm3, %v2584_v0, -inf }
 0x68c   : > { %2738 = vmax.xlane.f32.xlu1 %v2737_v2 }
 0x68e   : > { %v2657_v3 = vpop.f32.mrb[14].mxu0  ;;  %v2730_v5 = vpop.f32.mrb[12].mxu1 }
 0x68f   : > { %v4122_v6 = vpop.f32.mrb[15].mxu0  ;;  %v2740_v8 = vsel %vm1541_vm3, %v2657_v3, -inf  ;;  %v4127_v10 = vpop.f32.mrb[13].mxu1  ;;  %v2743_v11 = vsel %vm1541_vm3, %v2730_v5, -inf }
 0x690   : > { %2741 = vmax.xlane.f32.xlu0 %v2740_v8  ;;  %v3945_v8 = vld [vmem:[%s5893_s26] ss:$0 sm:$0xff] }
 0x694   : > { %2744 = vmax.xlane.f32.xlu0 %v2743_v11 }
 0x69d   : > { %2407 = vrot.lane.b32.xlu1 %v5535_v26, %s4823_s28  ;;  %s4676_s28 = scalar_lea.vmem %s4675_s18, 256 }
 0x715   : > { %v2736_v13 = vpop.xlane.xlu0 %2735 }
 0x716   : > { %v2746_v14 = vsub.f32 %v2511_v61, %v2736_v13  ;;  %v4228_v61 = vpack.c.bf16 %v3228_v60, %v3227_v58 }
 0x718   : > { %v2750_v12 = vmul.f32 1.442695, %v2746_v14 }
 0x719   : > { %v2739_v15 = vpop.xlane.xlu1 %2738 }
 0x71a   : > { %4408 = vpow2.f32 %v2750_v12  ;;  %v2747_v16 = vsub.f32 %v2584_v0, %v2739_v15 }
 0x71c   : > { %v2752_v17 = vmul.f32 1.442695, %v2747_v16 }
 0x71d   : > { %v2408_v18 = vpop.permute.xlu1 %2407  ;;  %v2742_v19 = vpop.xlane.xlu0 %2741 }
 0x71e   : > { %4410 = vpow2.f32 %v2752_v17  ;;  %v2748_v20 = vsub.f32 %v2657_v3, %v2742_v19  ;;  %2410 = vxpose.xlu1.b32.start.end [1/1] (short) (narrow) %v2408_v18, 32 }
 0x720   : > { %v2754_v21 = vmul.f32 1.442695, %v2748_v20 }
 0x721   : > { %v2745_v22 = vpop.xlane.xlu0 %2744 }
 0x722   : > { %4412 = vpow2.f32 %v2754_v21  ;;  %v2749_v23 = vsub.f32 %v2730_v5, %v2745_v22  ;;  %v3215_v22 = vlaneseq }
 0x724   : > { %v4409_v24 = vpop.eup %4408  ;;  %v2756_v25 = vmul.f32 1.442695, %v2749_v23 }
 0x725   : > { %v2758_v26 = vsel %vm1541_vm3, %v4409_v24, 0.0 }
 0x726   : > { %4414 = vpow2.f32 %v2756_v25  ;;  %2759 = vadd.xlane.f32.xlu0 %v2758_v26  ;;  %v5634_v26 = vld [vmem:[%s5432_s25] sm:$0x7]  ;;  %s5896_s25 = scalar_lea.vmem [#allocation14], %s5367_s10  ;;  %s5898_s10 = sld [smem:[#allocation29_spill]] }
 0x728   : > { %v4411_v27 = vpop.eup %4410 }
 0x729   : > { %v2761_v28 = vsel %vm1541_vm3, %v4411_v27, 0.0 }
 0x72a   : > { %2762 = vadd.xlane.f32.xlu0 %v2761_v28 }
 0x72c   : > { %v4413_v29 = vpop.eup %4412  ;;  %s3954_s0 = sshll.u32 %s5898_s10, 7 }
 0x72d   : > { %v2764_v30 = vsel %vm1541_vm3, %v4413_v29, 0.0 }
 0x72e   : > { %2765 = vadd.xlane.f32.xlu0 %v2764_v30 }
 0x730   : > { %v4415_v31 = vpop.eup %4414 }
 0x731   : > { %v2767_v32 = vsel %vm1541_vm3, %v4415_v31, 0.0 }
 0x732   : > { %2768 = vadd.xlane.f32.xlu0 %v2767_v32 }
 0x75f   : > { %2182 = vxpose.xlu0.b32.start [1/4] (short) (narrow) %v1950_v53, 8 }
 0x763   : > { %2183 = vxpose.xlu0.b32.cont [2/4] (short) (narrow) %v2026_v55, 8 }
 0x767   : > { %2184 = vxpose.xlu0.b32.cont [3/4] (short) (narrow) %v2102_v57, 8  ;;  %v3226_v57 = vld [vmem:[%s5382_s7 + $0x8] sm:$0xff] }
 0x76b   : > { %2185 = vxpose.xlu0.b32.end [4/4] (short) (narrow) %v2178_v59, 8  ;;  %v4225_v59 = vpack.c.bf16 %v3226_v57, %v3225_v56  ;;  %v3422_v56 = vld [vmem:[%s5447_s29 + $0x20] sm:$0xff]  ;;  %v3423_v57 = vld [vmem:[%s5447_s29 + $0x28] sm:$0xff] }
 0x76c   : > { %v4243_v58 = vpack.c.bf16 %v3423_v57, %v3422_v56 }
 0x79e   : > { %v2426_v36 = vpop.trf.xlu1 }
 0x7a2   : > { %v2427_v40 = vpop.trf.xlu1 }
 0x7a6   : > { %v2428_v47 = vpop.trf.xlu1 }
 0x7aa   : > { %v2429_v53 = vpop.trf.xlu1 }
 0x7b3   : > { %v2760_v33 = vpop.xlane.xlu0 %2759 }
 0x7b4   : > { %4416 = vrcp.f32 %v2760_v33 }
 0x7b7   : > { %v2763_v34 = vpop.xlane.xlu0 %2762 }
 0x7b8   : > { %4418 = vrcp.f32 %v2763_v34 }
 0x7bb   : > { %v2766_v35 = vpop.xlane.xlu0 %2765 }
 0x7bc   : > { %4420 = vrcp.f32 %v2766_v35 }
 0x7be   : > { %v4417_v37 = vpop.eup %4416 }
 0x7bf   : > { %v2771_v38 = vmul.f32 %v4417_v37, %v4409_v24  ;;  %v2769_v39 = vpop.xlane.xlu0 %2768  ;;  %v5630_v24 = vshrl.u32 %v3215_v22, 7 }
 0x7c0   : > { %4422 = vrcp.f32 %v2769_v39 }
 0x7c1   : > { %4129 = vmatpush3.xpose.msk.msra.mxu0 %vm1541_vm3, %v2771_v38  ;;  %v3217_v25 = vsub.s32 0, %v5630_v24 }
 0x7c2   : > { %v4419_v41 = vpop.eup %4418  ;;  %4138 = vmatprep.subr.mxu0 %v4822_v7 }
 0x7c3   : > { %v2773_v42 = vmul.f32 %v4419_v41, %v4411_v27  ;;  %v3218_v27 = vrot.slane %v5634_v26, %v3217_v25 }
 0x7c4   : > { %4131 = vmatmul.mubr.msk.f32.vlgmr.msra.gmra.mrb[16].mxu0 %vm1541_vm3, %v2426_v36 }
 0x7c5   : > { %4134 = vmatpush3.xpose.msk.msra.mxu1 %vm1541_vm3, %v2773_v42  ;;  %4140 = vmatprep.mubr.msk.f32.mxu0 %vm4821_vm1, %v4822_v7 }
 0x7c6   : > { %v4421_v43 = vpop.eup %4420  ;;  %4143 = vmatprep.subr.mxu1 %v4822_v7 }
 0x7c7   : > { %v2775_v46 = vmul.f32 %v4421_v43, %v4413_v29  ;;  %v3947_v29 = vld [vmem:[%s5894_s30] ss:$0 sm:$0xff] }
 0x7c8   : > { %4136 = vmatmul.mubr.msk.f32.vlgmr.msra.gmra.mrb[14].mxu1 %vm1541_vm3, %v2427_v40 }
 0x7c9   : > { %4139 = vmatpush3.xpose.msk.msra.mxu0 %vm1541_vm3, %v2775_v46  ;;  %4145 = vmatprep.mubr.msk.f32.mxu1 %vm4821_vm1, %v4822_v7  ;;  %v4231_v46 = vpack.c.bf16 %v3334_v45, %v3333_v44 }
 0x7ca   : > { %v4423_v49 = vpop.eup %4422  ;;  %4218 = vmatprep.subr.bf16.mxu0 %v4820_v4 }
 0x7cb   : > { %v2777_v52 = vmul.f32 %v4423_v49, %v4415_v31 }
 0x7cc   : > { %4141 = vmatmul.mubr.msk.f32.vlgmr.msra.gmra.mrb[18].mxu0 %vm1541_vm3, %v2428_v47  ;;  %v3335_v47 = vld [vmem:[%s5895_s11 + $0x10] sm:$0xff] }
 0x7cd   : > { %4144 = vmatpush3.xpose.msk.msra.mxu1 %vm1541_vm3, %v2777_v52  ;;  %4220 = vmatpush3.bf16.msra.mxu0 %v4219_v48  ;;  %v3336_v48 = vld [vmem:[%s5895_s11 + $0x18] sm:$0xff]  ;;  %v3420_v52 = vld [vmem:[%s5447_s29 + $0x10] sm:$0xff] }
 0x7ce   : > { %4221 = vmatprep.subr.bf16.mxu0 %v4820_v4  ;;  %4156 = vmatprep.mubr.msk.f32.mxu0 %vm4821_vm1, %v4822_v7  ;;  %v4234_v49 = vpack.c.bf16 %v3336_v48, %v3335_v47 }
 0x7cf   : > { %4224 = vmatprep.subr.bf16.mxu1 %v4820_v4 }
 0x7d0   : > { %4146 = vmatmul.mubr.msk.f32.vlgmr.msra.gmra.mrb[16].mxu1 %vm1541_vm3, %v2429_v53  ;;  %v4237_v53 = vpack.c.bf16 %v3419_v51, %v3418_v50 }
 0x7d1   : > { %4223 = vmatpush3.bf16.msra.mxu0 %v4222_v54  ;;  %4167 = vmatprep.mubr.msk.f32.mxu1 %vm4821_vm1, %v4822_v7  ;;  %v3421_v54 = vld [vmem:[%s5447_s29 + $0x18] sm:$0xff] }
 0x7d2   : > { %4230 = vmatprep.subr.bf16.mxu0 %v4820_v4  ;;  %4226 = vmatpush3.bf16.msra.mxu1 %v4225_v59 }
 0x7d3   : > { %4227 = vmatprep.subr.bf16.mxu1 %v4820_v4 }
 0x7d6   : > { %4229 = vmatpush3.bf16.msra.mxu1 %v4228_v61 }
 0x7d7   : > { %4236 = vmatprep.subr.bf16.mxu1 %v4820_v4 }
 0x7df   : > { %v2198_v55 = vpop.trf.xlu0 }
 0x7e0   : > { %4157 = vmatmul.mubr.msk.f32.vlgmr.msra.gmra.mrb[20].mxu0 %vm1071_vm2, %v2198_v55  ;;  %v4240_v55 = vpack.c.bf16 %v3421_v54, %v3420_v52 }
 0x7e1   : > { %4178 = vmatprep.mubr.msk.f32.mxu0 %vm4821_vm1, %v4822_v7  ;;  %4232 = vmatpush3.bf16.msra.mxu0 %v4231_v46 }
 0x7e2   : > { %4233 = vmatprep.subr.bf16.mxu0 %v4820_v4 }
 0x7e5   : > { %4235 = vmatpush3.bf16.msra.mxu0 %v4234_v49 }
 0x897   : > { %v2850_v62 = vpop.f32.mrb[16].mxu0 }
 0x898   : > { %3082 = vxpose.xlu1.b32.start [1/4] (short) (narrow) %v2850_v62, 8  ;;  %v4132_v63 = vpop.f32.mrb[17].mxu0  ;;  %v3325_v62 = vsub.s32 1, %v5630_v24 }
 0x89a   : > { %v3326_v63 = vrot.slane %v5634_v26, %v3325_v62 }
 0x89b   : > { %v2926_v0 = vpop.f32.mrb[14].mxu1 }
 0x89c   : > { %v4137_v1 = vpop.f32.mrb[15].mxu1  ;;  %3083 = vxpose.xlu1.b32.cont [2/4] (short) (narrow) %v2926_v0, 8 }
 0x89f   : > { %v3002_v2 = vpop.f32.mrb[18].mxu0 }
 0x8a0   : > { %3084 = vxpose.xlu1.b32.cont [3/4] (short) (narrow) %v3002_v2, 8  ;;  %v4142_v3 = vpop.f32.mrb[19].mxu0 }
 0x8a3   : > { %v3078_v5 = vpop.f32.mrb[16].mxu1 }
 0x8a4   : > { %v4147_v6 = vpop.f32.mrb[17].mxu1  ;;  %3085 = vxpose.xlu1.b32.end [4/4] (short) (narrow) %v3078_v5, 8 }
 0x8a5   : > { %v3424_v6 = vld [vmem:[%s5447_s29 + $0x30] sm:$0xff] }
 0x8b3   : > { %v3196_v10 = vpop.f32.mrb[20].mxu0 }
 0x8b4   : > { %v3197_v11 = vadd.f32 %v3945_v8, %v3196_v10  ;;  %v4158_v13 = vpop.f32.mrb[21].mxu0  ;;  %v3949_v10 = vld [vmem:[%s5896_s25] ss:$0 sm:$0xff] }
 0x8b6   : > { %v3200_v14 = vadd.f32 %v3197_v11, %v5463_v9 }
 0x8b8   : > { %v3201_v12 = vsel %vm1071_vm2, %v3200_v14, 0.0 }
 0x8b9   : > { %3202 = vadd.xlane.f32.xlu0 %v3201_v12 }
 0x918   : > { %v3098_v15 = vpop.trf.xlu1 }
 0x919   : > { %4168 = vmatmul.mubr.msk.f32.vlgmr.msra.gmra.mrb[18].mxu1 %vm1071_vm2, %v3098_v15  ;;  %v3951_v15 = vld [vmem:[%s1049_s22] ss:$0 sm:$0xff]  ;;  %s3546_s22 = sshll.u32 %s5451_s17, 4  ;;  %s5684_s22 = int_to_ptr.vmem [resolvable:$true] %s3546_s22 }
 0x91a   : > { %4197 = vmatprep.mubr.msk.f32.mxu1 %vm4821_vm1, %v4822_v7  ;;  %v5637_v7 = vld [vmem:[%s5437_s15] sm:$0x7]  ;;  %4238 = vmatpush3.bf16.msra.mxu1 %v4237_v53  ;;  %s4670_s21 = scalar_lea.vmem %s5684_s22, 128  ;;  %p4677_p4 = scmp.lt.s32.totalorder %s5684_s22, %s4675_s18 }
 0x91b   : > { %v3223_v31 = vrot.slane %v5637_v7, %v3217_v25  ;;  %4239 = vmatprep.subr.bf16.mxu1 %v4820_v4  ;;  %v3331_v1 = vrot.slane %v5637_v7, %v3325_v62  ;;  %p4671_p12 = scmp.ne.s32.totalorder %s5684_s22, %s4670_s21  ;;  %p4678_p11 = scmp.lt.s32.totalorder %s4676_s28, %s4670_s21 }
 0x91d   : > { %p4672_p13 = pnand %p4671_p12, %p5901_p6  ;;  %p4679_p2 = por %p4678_p11, %p4677_p4 }
 0x91e   : > { %4241 = vmatpush3.bf16.msra.mxu1 %v4240_v55 }
 0x91f   : > { %4242 = vmatprep.subr.bf16.mxu1 %v4820_v4  ;;  %p4673_p0 = pneg %p4672_p13 }
 0x921   : > { %p4680_p5 = pnand %p4679_p2, %p4673_p0 }
 0x922   : > { %4244 = vmatpush3.bf16.msra.mxu1 %v4243_v58 }
 0x923   : > { %4245 = vmatprep.subr.bf16.mxu1 %v4820_v4  ;;  %v3425_v4 = vld [vmem:[%s5447_s29 + $0x38] sm:$0xff]  ;;  %s5900_s29 = sld [smem:[#allocation60_spill]] }
 0x924   : > { %v4246_v8 = vpack.c.bf16 %v3425_v4, %v3424_v6 }
 0x926   : > { %4247 = vmatpush3.bf16.msra.mxu1 %v4246_v8 }
 0x929   : > { %s5682_s5 = scalar_lea.hbm %s5900_s29, %s3954_s0 }
 0x946   : > { %v3203_v16 = vpop.xlane.xlu0 %3202 }
 0x947   : > { %v3205_v17 = vmul.f32 0.03125, %v3203_v16 }
 0x949   : > { %v3206_v18 = vsub.f32 %v3200_v14, %v3205_v17 }
 0x94b   : > { %v3207_v19 = vmul.f32 %v3206_v18, %v3206_v18 }
 0x94d   : > { %v3208_v20 = vsel %vm1071_vm2, %v3207_v19, 0.0 }
 0x94e   : > { %3209 = vadd.xlane.f32.xlu1 %v3208_v20 }
 0x9db   : > { %v3210_v9 = vpop.xlane.xlu1 %3209 }
 0x9dc   : > { %v3211_v21 = vmul.f32 0.03125, %v3210_v9 }
 0x9de   : > { %v3212_v23 = vadd.f32 1e-05, %v3211_v21 }
 0x9e0   : > { %4424 = vrsqrt.f32 %v3212_v23 }
 0x9ea   : > { %v4425_v28 = vpop.eup %4424 }
 0x9eb   : > { %v3214_v30 = vmul.f32 %v4425_v28, %v3206_v18 }
 0x9ec   : > { %v3305_v32 = vpop.f32.mrb[18].mxu1 }
 0x9ed   : > { %v3306_v33 = vadd.f32 %v3947_v29, %v3305_v32  ;;  %v4169_v34 = vpop.f32.mrb[19].mxu1  ;;  %v3219_v35 = vmul.f32 %v3218_v27, %v3214_v30  ;;  %v3523_v30 = vsub.s32 2, %v5630_v24 }
 0x9ef   : > { %v3224_v36 = vadd.f32 %v3223_v31, %v3219_v35  ;;  %v3524_v31 = vrot.slane %v5634_v26, %v3523_v30  ;;  %v3529_v34 = vrot.slane %v5637_v7, %v3523_v30 }
 0x9f1   : > { %v3309_v37 = vadd.f32 %v3306_v33, %v3224_v36 }
 0x9f3   : > { %v3310_v38 = vsel %vm1071_vm2, %v3309_v37, 0.0 }
 0x9f4   : > { %3311 = vadd.xlane.f32.xlu0 %v3310_v38 }
 0xa81   : > { %v3312_v39 = vpop.xlane.xlu0 %3311 }
 0xa82   : > { %v3313_v40 = vmul.f32 0.03125, %v3312_v39 }
 0xa84   : > { %v3314_v41 = vsub.f32 %v3309_v37, %v3313_v40 }
 0xa86   : > { %v3315_v42 = vmul.f32 %v3314_v41, %v3314_v41 }
 0xa88   : > { %v3316_v43 = vsel %vm1071_vm2, %v3315_v42, 0.0 }
 0xa89   : > { %3317 = vadd.xlane.f32.xlu1 %v3316_v43 }
 0xb16   : > { %v3318_v59 = vpop.xlane.xlu1 %3317 }
 0xb17   : > { %v3319_v60 = vmul.f32 0.03125, %v3318_v59 }
 0xb19   : > { %v3320_v61 = vadd.f32 1e-05, %v3319_v60 }
 0xb1b   : > { %4426 = vrsqrt.f32 %v3320_v61 }
 0xb25   : > { %v4427_v0 = vpop.eup %4426 }
 0xb26   : > { %v3322_v2 = vmul.f32 %v4427_v0, %v3314_v41 }
 0xb28   : > { %v3327_v3 = vmul.f32 %v3326_v63, %v3322_v2 }
 0xb2a   : > { %v3332_v5 = vadd.f32 %v3331_v1, %v3327_v3 }
 0xb2c   : > { %4179 = vmatmul.mubr.msk.f32.vlgmr.msra.gmra.mrb[22].mxu0 %vm1071_vm2, %v3332_v5 }
 0xbff   : > { %v3413_v11 = vpop.f32.mrb[22].mxu0 }
 0xc00   : > { %v3414_v13 = vadd.f32 %v3949_v10, %v3413_v11  ;;  %v4180_v14 = vpop.f32.mrb[23].mxu0 }
 0xc02   : > { %v3417_v12 = vmax.f32 %v3414_v13, 0.0 }
 0xc04   : > { %4198 = vmatmul.mubr.msk.f32.vlgmr.msra.gmra.mrb[20].mxu1 %vm3433_vm4, %v3417_v12 }
 0xcd7   : > { %v3503_v16 = vpop.f32.mrb[20].mxu1 }
 0xcd8   : > { %v3504_v17 = vadd.f32 %v3951_v15, %v3503_v16  ;;  %v4199_v18 = vpop.f32.mrb[21].mxu1 }
 0xcda   : > { %v3507_v19 = vadd.f32 %v3504_v17, %v3332_v5 }
 0xcdc   : > { %v3508_v20 = vsel %vm1071_vm2, %v3507_v19, 0.0 }
 0xcdd   : > { %3509 = vadd.xlane.f32.xlu0 %v3508_v20 }
 0xd6a   : > { %v3510_v9 = vpop.xlane.xlu0 %3509 }
 0xd6b   : > { %v3511_v21 = vmul.f32 0.03125, %v3510_v9 }
 0xd6d   : > { %v3512_v22 = vsub.f32 %v3507_v19, %v3511_v21 }
 0xd6f   : > { %v3513_v23 = vmul.f32 %v3512_v22, %v3512_v22 }
 0xd71   : > { %v3514_v25 = vsel %vm1071_vm2, %v3513_v23, 0.0 }
 0xd72   : > { %3515 = vadd.xlane.f32.xlu1 %v3514_v25 }
 0xdff   : > { %v3516_v27 = vpop.xlane.xlu1 %3515 }
 0xe00   : > { %v3517_v28 = vmul.f32 0.03125, %v3516_v27 }
 0xe02   : > { %v3518_v29 = vadd.f32 1e-05, %v3517_v28 }
 0xe04   : > { %4428 = vrsqrt.f32 %v3518_v29 }
 0xe0e   : > { %v4429_v32 = vpop.eup %4428 }
 0xe0f   : > { %v3520_v33 = vmul.f32 %v4429_v32, %v3512_v22 }
 0xe11   : > { %v3525_v35 = vmul.f32 %v3524_v31, %v3520_v33 }
 0xe13   : > { %v3530_v36 = vadd.f32 %v3529_v34, %v3525_v35 }
 0xe15   : > { %3531 = vst.msk [vmem:[%s5451_s17] sm:$0xff] %vm1071_vm2, %v3530_v36 }
 0xe16   : > { %4683 = shalt.err (!%p4680_p5)
}
 0xe17   : > { %s4684_s13 = scalar_lea.hbm %s5682_s5, 128  ;;  %s4688_s27 = scalar_lea.hbm %s5900_s29, 256 }
 0xe18   : > { %p4685_p7 = scmp.ne.s32.totalorder %s5682_s5, %s4684_s13  ;;  %p4689_p3 = scmp.lt.u32.totalorder %s5682_s5, %s5900_s29 }
 0xe19   : > { %p4690_p8 = scmp.lt.u32.totalorder %s4688_s27, %s4684_s13  ;;  %p4692_p12 = scmp.lt.u32.totalorder %s4684_s13, %s5682_s5 }
 0xe1a   : > { %p4686_p10 = pnand %p4685_p7, %p5901_p6 }
 0xe1b   : > { %p4691_p1 = por %p4690_p8, %p4689_p3 }
 0xe1c   : > { %p4687_p9 = pneg %p4686_p10 }
 0xe1d   : > { %p4693_p13 = por %p4692_p12, %p4691_p1 }
 0xe1f   : > { %p4694_p0 = pnand %p4693_p13, %p4687_p9 }
 0xe21   : > { %4697 = shalt.err (!%p4694_p0)
}
 0xe22   : > { %4264 = dma.vmem_to_hbm [thread:$0]  (%p5901_p6), %s5684_s22, 128, %s5682_s5, %s3533_s9  }
 0xe23 PF: > { %s5902_s12 = sld [smem:[#allocation32_spill]]  ;;  %s5903_s14 = sld [smem:[#allocation25_spill]] }
 0xe24   : > { %s5904_s24 = sld [smem:[#allocation39_spill]] }
 0xe29   : > { %p4296_p4 = scmp.ge.s32.totalorder %s5902_s12, 2  ;;  %s3558_s7 = sand.u32 1, %s5903_s14  }
 0xe2a   : > { %p5905_p11 = scmp.ne.s32.totalorder %s5904_s24, 0  ;;  %s3559_s4 = scalar_lea.sflag [#allocation4], %s3558_s7 }
 0xe2c   : > { %p4292_p2 = pnand %p4296_p4, %p5905_p11 }
 0xe2e   : > { %4763 = dma.done.wait (!%p4292_p2), %s3559_s4, 128  }
 0xe2f   : > { %4765 = vsyncadd (!%p4292_p2), %s3559_s4, 4294967168  ;;  %s47_s3 = sadd.s32 1, %s5902_s12   ;;  %s5906_s0 = sld [smem:[#allocation23_spill]] }
 0xe30   : > { %p44_p5 = scmp.ge.s32.totalorder %s47_s3, 6   ;;  %s5907_s30 = sld [smem:[#allocation24_spill]] }
 0xe31   : > { %s5908_s20 = sld [smem:[#allocation34_spill]]  ;;  %s5909_s21 = sld [smem:[#allocation26_spill]] }
 0xe32   : > { %s5910_s1 = sld [smem:[#allocation27_spill]]  ;;  %s5911_s22 = sld [smem:[#allocation38_spill]] }
 0xe33   : > { %s5912_s2 = sld [smem:[#allocation30_spill]]  ;;  %s5913_s23 = sld [smem:[#allocation31_spill]] }
 0xe34   : > { %s5914_s24 = sld [smem:[#allocation33_spill]]  ;;  %s5915_s25 = sld [smem:[#allocation36_spill]] }
 0xe35   :  { %46 = sbr.rel (!%p44_p5) target bundleno = 38 (0x26), region = 260 }
 0xe3c   :  { %3564 = vsyncpa [#allocation3], 1 }
 0xe3d   :  { %3566 = vsyncpa [#allocation3 + $0x1], 1 }
 0xe3e   :  { %3567 = vsyncpa [#allocation6], 1 }
 0xe3f   :  { %3569 = vsyncpa [#allocation6 + $0x1], 1 }
 0xe40   :  { %3570 = vsyncpa [#allocation9], 1 }
 0xe41   :  { %3572 = vsyncpa [#allocation9 + $0x1], 1 }
 0xe42   :  { %3573 = vsyncpa [#allocation12], 1 }
 0xe43   :  { %3575 = vsyncpa [#allocation12 + $0x1], 1 }
 0xe44   :  { %3576 = vsyncpa [#allocation15], 1 }
 0xe45   :  { %3578 = vsyncpa [#allocation15 + $0x1], 1 }
 0xe46   :  { %3579 = vsyncpa [#allocation4], 1 }
 0xe47   :  { %3581 = vsyncpa [#allocation4 + $0x1], 1 }

</bundles_post_ra>
